<compile_context>
chip_gen: v7x
topology: tpu7x:2x2x1
jax: 0.10.0
libtpu: 0.0.40
codegen_flags: <defaults>
</compile_context>

<pallas_src>
import numpy as np
import jax
import jax.numpy as jnp
from jax.experimental import pallas as pl
from jax.experimental.pallas import tpu as pltpu


def _round_up(x, m):
    return ((x + m - 1) // m) * m


# --------------------------------------------------------------------------
# Fused forward kernel: conv1 -> conv2 -> encoder FC -> critic MLP head.
# Everything stays in VMEM / vregs; only the final (B, 1) q is written to HBM.
# --------------------------------------------------------------------------
def _sac_critic_kernel(x_ref, act_ref, a1_ref, c1b_ref, a2_ref, c2b_ref,
                       we_ref, be_ref, w1a_ref, w1b_ref, b1_ref, w2_ref,
                       b2_ref, o_ref, y1_ref):
    f32, bf16 = jnp.float32, jnp.bfloat16
    H = x_ref.shape[0]            # conv1 input rows
    OH1 = y1_ref.shape[0]         # conv1 output rows
    OH2 = we_ref.shape[0]         # conv2 output rows
    KH = a1_ref.shape[0]          # kernel height (3)

    # conv1 (3x3, s=2, p=1) as a block-banded structured conv: width+channels
    # folded into 3 small band matrices, height as a static shifted-row loop.
    # Zero padding along H is handled by simply skipping out-of-range rows.
    for oh in range(OH1):
        acc = c1b_ref[...]                              # (1, OW1*OC1) f32
        for kh in range(KH):
            ih = 2 * oh + kh - 1
            if 0 <= ih < H:
                acc = acc + jnp.dot(x_ref[ih], a1_ref[kh],
                                    preferred_element_type=f32)
        y1_ref[oh] = jnp.maximum(acc, 0.0).astype(bf16)  # bf16 intermediate

    # conv2 (same banded structure), fused with the encoder FC: each conv2
    # output row feeds straight into its slice of the encoder weight — no
    # flatten / reshape, no second scratch buffer.
    e = be_ref[...]                                     # (1, out_dim) f32
    for oh in range(OH2):
        acc = c2b_ref[...]
        for kh in range(KH):
            ih = 2 * oh + kh - 1
            if 0 <= ih < OH1:
                acc = acc + jnp.dot(y1_ref[ih], a2_ref[kh],
                                    preferred_element_type=f32)
        row = jnp.maximum(acc, 0.0).astype(bf16)        # (block_b, OW2*OC2)
        e = e + jnp.dot(row, we_ref[oh], preferred_element_type=f32)
    e = jnp.maximum(e, 0.0)

    # critic fc1 on concat(conv_out, act): concat avoided by splitting the
    # weight; the action block is zero-padded to 16 rows (full bf16 sublane
    # pack, no 5-row MXU tile).
    h = (jnp.dot(e.astype(bf16), w1a_ref[...], preferred_element_type=f32)
         + jnp.dot(act_ref[...], w1b_ref[...], preferred_element_type=f32)
         + b1_ref[...])
    h = jnp.maximum(h, 0.0)

    # critic fc2 (128 -> 1): VPU multiply + lane reduction; bias is SMEM scalar.
    q = jnp.sum(h * w2_ref[...], axis=-1, keepdims=True) + b2_ref[0]
    o_ref[...] = q.astype(o_ref.dtype)


# --------------------------------------------------------------------------
# Wrapper: one layout change at the boundary + a single pallas_call
# --------------------------------------------------------------------------
def sac_critic_forward(params, obs, act):
    """obs: (B, C, H, W) NCHW (PyTorch layout), act: (B, A)  ->  (B, 1)."""
    B, C, H, W = obs.shape
    A = act.shape[1]
    A_pad = params["w1b"].shape[0]
    assert params["a1"].shape[1] == W * C

    # One layout change at the boundary: NCHW -> (H, B, W*C) channels-last rows
    # (so x_ref[ih] is a contiguous (block_b, W*C) tile in-kernel), cast bf16
    # to halve the per-step activation DMA.  Action zero-padded to 16 cols.
    x = obs.transpose(2, 0, 3, 1).reshape(H, B, W * C).astype(jnp.bfloat16)
    a = jnp.pad(act.astype(jnp.bfloat16), ((0, 0), (0, A_pad - A)))

    # Batch tiling: single block for tiny B; otherwise >= 2 blocks (both v7x
    # TensorCores busy), capped at 512 rows/block (amortizes the ~600-cycle
    # per-grid-step overhead; VMEM stays well under every gen's scoped limit).
    if B <= 32:
        block_b = _round_up(B, 16)
    else:
        block_b = min(512, _round_up((B + 1) // 2, 16))
    b_pad = _round_up(B, block_b)
    if b_pad != B:
        x = jnp.pad(x, ((0, 0), (0, b_pad - B), (0, 0)))
        a = jnp.pad(a, ((0, b_pad - B), (0, 0)))

    OH1 = (H + 2 - 3) // 2 + 1                 # conv1 output rows
    row1_width = params["a1"].shape[2]         # OW1 * OC1

    def _full(arr):  # weight blocks: full array, resident across the grid
        return pl.BlockSpec(arr.shape, lambda i: (0,) * arr.ndim)

    q = pl.pallas_call(
        _sac_critic_kernel,
        out_shape=jax.ShapeDtypeStruct((b_pad, 1), jnp.float32),
        grid=(b_pad // block_b,),
        in_specs=[
            pl.BlockSpec((H, block_b, W * C), lambda i: (0, i, 0)),   # obs rows
            pl.BlockSpec((block_b, A_pad), lambda i: (i, 0)),         # action
            _full(params["a1"]), _full(params["c1b"]),
            _full(params["a2"]), _full(params["c2b"]),
            _full(params["we"]), _full(params["be"]),
            _full(params["w1a"]), _full(params["w1b"]), _full(params["b1"]),
            _full(params["w2"]),
            pl.BlockSpec(memory_space=pltpu.MemorySpace.SMEM),        # b2 scalar
        ],
        out_specs=pl.BlockSpec((block_b, 1), lambda i: (i, 0)),
        scratch_shapes=[pltpu.VMEM((OH1, block_b, row1_width), jnp.bfloat16)],
        compiler_params=pltpu.CompilerParams(
            dimension_semantics=("parallel",)),
    )(x, a,
      params["a1"], params["c1b"], params["a2"], params["c2b"],
      params["we"], params["be"], params["w1a"], params["w1b"], params["b1"],
      params["w2"], params["b2"])
    return q[:B]


# --------------------------------------------------------------------------
# Block-banded conv fold: width+channels only (height stays a kernel loop)
# --------------------------------------------------------------------------
def _conv_to_band(w_oihw, b_o, W_in, stride, pad):
    """Fold a KHxKW conv along (width, channels) into KH band matrices.

    A[kh][iw*IC + ic, ow*OC + oc] = w[oc, ic, kh, kw]  with  iw = ow*stride+kw-pad
    (out-of-range iw omitted => zero padding along width).  The height dim is
    handled by the kernel's shifted-row loop, so weight bytes are
    O(KH*W*IC*OW*OC), not O((H*W)^2 * ...) like a full dense fold.
    """
    OC, IC, KH, KW = w_oihw.shape
    OW = (W_in + 2 * pad - KW) // stride + 1
    A = np.zeros((KH, W_in * IC, OW * OC), dtype=np.float32)
    for kh in range(KH):
        for ow in range(OW):
            for kw in range(KW):
                iw = ow * stride + kw - pad
                if 0 <= iw < W_in:
                    for ic in range(IC):
                        A[kh, iw * IC + ic, ow * OC:(ow + 1) * OC] = \
                            w_oihw[:, ic, kh, kw]
    bias_row = np.tile(np.asarray(b_o, np.float32), OW)[None, :]
    return A, bias_row, OW


# --------------------------------------------------------------------------
# Parameter init (mirrors weights_init) + fold into kernel-ready layout
# --------------------------------------------------------------------------
def _xavier_uniform(key, shape, fan_in, fan_out, gain=1.0):
    bound = gain * (6.0 / (fan_in + fan_out)) ** 0.5
    return jax.random.uniform(key, shape, jnp.float32, -bound, bound)


def _xavier_normal(key, shape, fan_in, fan_out, gain=1.0):
    std = gain * (2.0 / (fan_in + fan_out)) ** 0.5
    return std * jax.random.normal(key, shape, jnp.float32)


def _conv_default_bias(key, oc, fan_in):
    bound = 1.0 / fan_in ** 0.5
    return jax.random.uniform(key, (oc,), jnp.float32, -bound, bound)


def init_sac_critic_params(key, obs_shape=(2, 16, 16), action_dim=5, out_dim=128):
    C, H, W = obs_shape
    k = jax.random.split(key, 7)

    # Raw PyTorch-layout weights (weights_init: xavier_normal conv weight,
    # xavier_uniform + zero bias for Linear, PyTorch-default conv bias).
    c1_w = np.asarray(_xavier_normal(k[0], (16, C, 3, 3), fan_in=C * 9, fan_out=16 * 9))
    c1_b = np.asarray(_conv_default_bias(k[1], 16, fan_in=C * 9))
    c2_w = np.asarray(_xavier_normal(k[2], (32, 16, 3, 3), fan_in=16 * 9, fan_out=32 * 9))
    c2_b = np.asarray(_conv_default_bias(k[3], 32, fan_in=16 * 9))

    # Structured (block-banded) conv fold: tiny dense-ish band matrices only.
    a1, c1b, OW1 = _conv_to_band(c1_w, c1_b, W, stride=2, pad=1)
    OH1 = (H + 2 - 3) // 2 + 1
    a2, c2b, OW2 = _conv_to_band(c2_w, c2_b, OW1, stride=2, pad=1)
    OH2 = (OH1 + 2 - 3) // 2 + 1
    OC2 = 32
    flat = OC2 * OH2 * OW2

    # Encoder FC Linear(flat, out_dim), stored per conv2-row with rows permuted
    # from PyTorch NCHW-flatten order (oc, oh, ow) to the kernel's per-row
    # (ow*OC + oc) order, so no in-kernel reshape is ever needed.
    e_w = np.asarray(_xavier_uniform(k[4], (flat, out_dim), fan_in=flat, fan_out=out_dim))
    we_rows = (e_w.reshape(OC2, OH2, OW2, out_dim)
               .transpose(1, 2, 0, 3).reshape(OH2, OW2 * OC2, out_dim))

    # Critic head: Linear(out_dim + A, 128) -> ReLU -> Linear(128, 1).
    fin = out_dim + action_dim
    f1_w = np.asarray(_xavier_uniform(k[5], (fin, 128), fan_in=fin, fan_out=128))
    f2_w = np.asarray(_xavier_uniform(k[6], (128, 1), fan_in=128, fan_out=1))
    a_pad = _round_up(max(action_dim, 1), 16)
    w1b = np.zeros((a_pad, 128), np.float32)
    w1b[:action_dim] = f1_w[out_dim:]

    bf16, f32 = jnp.bfloat16, jnp.float32
    return {
        # MXU operands in bf16 (f32 accumulation in-kernel); biases in f32.
        "a1": jnp.asarray(a1, bf16), "c1b": jnp.asarray(c1b, f32),
        "a2": jnp.asarray(a2, bf16), "c2b": jnp.asarray(c2b, f32),
        "we": jnp.asarray(we_rows, bf16), "be": jnp.zeros((1, out_dim), f32),
        "w1a": jnp.asarray(f1_w[:out_dim], bf16),     # conv-feature rows
        "w1b": jnp.asarray(w1b, bf16),                # action rows, padded to 16
        "b1": jnp.zeros((1, 128), f32),
        "w2": jnp.asarray(f2_w.T, f32),               # (1, 128) row, VPU path
        "b2": jnp.zeros((1,), f32),                   # SMEM scalar
        # Raw f32 weights kept only for the unfolded reference check.
        "raw": {"c1_w": jnp.asarray(c1_w), "c1_b": jnp.asarray(c1_b),
                "c2_w": jnp.asarray(c2_w), "c2_b": jnp.asarray(c2_b),
                "e_w": jnp.asarray(e_w), "f1_w": jnp.asarray(f1_w),
                "f2_w": jnp.asarray(f2_w)},
    }


# --------------------------------------------------------------------------
# Pure-JAX reference using the *unfolded* f32 conv weights (true baseline)
# --------------------------------------------------------------------------
def _reference_forward(params, obs, act):
    r = params["raw"]
    x = obs.astype(jnp.float32)
    y = jax.lax.conv_general_dilated(x, r["c1_w"], (2, 2), ((1, 1), (1, 1)),
                                     dimension_numbers=("NCHW", "OIHW", "NCHW"))
    y = jnp.maximum(y + r["c1_b"][None, :, None, None], 0.0)
    y = jax.lax.conv_general_dilated(y, r["c2_w"], (2, 2), ((1, 1), (1, 1)),
                                     dimension_numbers=("NCHW", "OIHW", "NCHW"))
    y = jnp.maximum(y + r["c2_b"][None, :, None, None], 0.0)
    f = y.reshape(y.shape[0], -1)                        # NCHW flatten (PyTorch)
    e = jnp.maximum(f @ r["e_w"], 0.0)                   # encoder bias = 0
    h = jnp.concatenate([e, act.astype(jnp.float32)], axis=1)
    h = jnp.maximum(h @ r["f1_w"], 0.0)                  # fc1 bias = 0
    return h @ r["f2_w"]                                 # fc2 bias = 0


if __name__ == "__main__":
    key = jax.random.PRNGKey(0)
    kp, kd = jax.random.split(key, 2)

    obs_shape = (2, 16, 16)   # (C, H, W): module's 2 channels, small spatial size
    action_dim = 5

    params = init_sac_critic_params(kp, obs_shape=obs_shape, action_dim=action_dim)
    fwd = jax.jit(sac_critic_forward)

    # Exercise both the single-block path (B=2) and the >=2-block padded path.
    for batch in (2, 40):
        ko, ka = jax.random.split(jax.random.fold_in(kd, batch), 2)
        obs = jax.random.normal(ko, (batch,) + obs_shape, jnp.float32)
        act = jax.random.normal(ka, (batch, action_dim), jnp.float32)

        q = jax.block_until_ready(fwd(params, obs, act))
        assert q.shape == (batch, 1) and q.dtype == jnp.float32

        q_ref = np.asarray(_reference_forward(params, obs, act))
        assert np.allclose(np.asarray(q), q_ref, rtol=5e-2, atol=5e-2), (
            float(np.abs(np.asarray(q) - q_ref).max()))

    print("KERNEL_OK")
</pallas_src>

<mosaic_0001>
module attributes {stable_mosaic.version = 11 : i64} {
  func.func @_sac_critic_kernel(%arg0: i32, %arg1: memref<16x16x32xbf16, #tpu.memory_space<vmem>>, %arg2: memref<16x16xbf16, #tpu.memory_space<vmem>>, %arg3: memref<3x32x128xbf16, #tpu.memory_space<vmem>>, %arg4: memref<1x128xf32, #tpu.memory_space<vmem>>, %arg5: memref<3x128x128xbf16, #tpu.memory_space<vmem>>, %arg6: memref<1x128xf32, #tpu.memory_space<vmem>>, %arg7: memref<4x128x128xbf16, #tpu.memory_space<vmem>>, %arg8: memref<1x128xf32, #tpu.memory_space<vmem>>, %arg9: memref<128x128xbf16, #tpu.memory_space<vmem>>, %arg10: memref<16x128xbf16, #tpu.memory_space<vmem>>, %arg11: memref<1x128xf32, #tpu.memory_space<vmem>>, %arg12: memref<1x128xf32, #tpu.memory_space<vmem>>, %arg13: memref<1xf32, #tpu.memory_space<smem>>, %arg14: memref<16x1xf32, #tpu.memory_space<vmem>>, %arg15: memref<8x16x128xbf16, #tpu.memory_space<vmem>>) attributes {dimension_semantics = [#tpu.dimension_semantics<parallel>], iteration_bounds = array<i64: 1>, scalar_prefetch = 0 : i64, scratch_operands = 1 : i64, tpu.core_type = #tpu.core_type<tc>, window_params = [{transform_indices = @transform_0, window_bounds = array<i64: 16, 16, 32>}, {transform_indices = @transform_1, window_bounds = array<i64: 16, 16>}, {pipeline_mode = #tpu.pipeline_mode<synchronous>, transform_indices = @transform_2, window_bounds = array<i64: 3, 32, 128>}, {pipeline_mode = #tpu.pipeline_mode<synchronous>, transform_indices = @transform_3, window_bounds = array<i64: 1, 128>}, {pipeline_mode = #tpu.pipeline_mode<synchronous>, transform_indices = @transform_4, window_bounds = array<i64: 3, 128, 128>}, {pipeline_mode = #tpu.pipeline_mode<synchronous>, transform_indices = @transform_5, window_bounds = array<i64: 1, 128>}, {pipeline_mode = #tpu.pipeline_mode<synchronous>, transform_indices = @transform_6, window_bounds = array<i64: 4, 128, 128>}, {pipeline_mode = #tpu.pipeline_mode<synchronous>, transform_indices = @transform_7, window_bounds = array<i64: 1, 128>}, {pipeline_mode = #tpu.pipeline_mode<synchronous>, transform_indices = @transform_8, window_bounds = array<i64: 128, 128>}, {pipeline_mode = #tpu.pipeline_mode<synchronous>, transform_indices = @transform_9, window_bounds = array<i64: 16, 128>}, {pipeline_mode = #tpu.pipeline_mode<synchronous>, transform_indices = @transform_10, window_bounds = array<i64: 1, 128>}, {pipeline_mode = #tpu.pipeline_mode<synchronous>, transform_indices = @transform_11, window_bounds = array<i64: 1, 128>}, {transform_indices = @transform_12, window_bounds = array<i64: 1>}, {transform_indices = @transform_13, window_bounds = array<i64: 16, 1>}]} {
    %c0 = arith.constant 0 : index
    %c0_0 = arith.constant 0 : index
    %0 = vector.load %arg4[%c0, %c0_0] : memref<1x128xf32, #tpu.memory_space<vmem>>, vector<1x128xf32>
    %c0_1 = arith.constant 0 : index
    %c0_2 = arith.constant 0 : index
    %c0_3 = arith.constant 0 : index
    %1 = vector.load %arg1[%c0_1, %c0_2, %c0_3] : memref<16x16x32xbf16, #tpu.memory_space<vmem>>, vector<1x16x32xbf16>
    %2 = vector.shape_cast %1 : vector<1x16x32xbf16> to vector<16x32xbf16>
    %c1 = arith.constant 1 : index
    %c0_4 = arith.constant 0 : index
    %c0_5 = arith.constant 0 : index
    %3 = vector.load %arg3[%c1, %c0_4, %c0_5] : memref<3x32x128xbf16, #tpu.memory_space<vmem>>, vector<1x32x128xbf16>
    %4 = vector.shape_cast %3 : vector<1x32x128xbf16> to vector<32x128xbf16>
    %cst = arith.constant dense<0.000000e+00> : vector<16x128xf32>
    %5 = tpu.matmul %2, %4, %cst {dimension_numbers = #tpu.dot_dimension_numbers<[1], [0], [0], [1], [0, 0, 1, 1], [], []>} : vector<16x32xbf16>, vector<32x128xbf16>, vector<16x128xf32> -> vector<16x128xf32>
    %6 = vector.broadcast %0 : vector<1x128xf32> to vector<16x128xf32>
    %7 = arith.addf %6, %5 : vector<16x128xf32>
    %c1_6 = arith.constant 1 : index
    %c0_7 = arith.constant 0 : index
    %c0_8 = arith.constant 0 : index
    %8 = vector.load %arg1[%c1_6, %c0_7, %c0_8] : memref<16x16x32xbf16, #tpu.memory_space<vmem>>, vector<1x16x32xbf16>
    %9 = vector.shape_cast %8 : vector<1x16x32xbf16> to vector<16x32xbf16>
    %c2 = arith.constant 2 : index
    %c0_9 = arith.constant 0 : index
    %c0_10 = arith.constant 0 : index
    %10 = vector.load %arg3[%c2, %c0_9, %c0_10] : memref<3x32x128xbf16, #tpu.memory_space<vmem>>, vector<1x32x128xbf16>
    %11 = vector.shape_cast %10 : vector<1x32x128xbf16> to vector<32x128xbf16>
    %cst_11 = arith.constant dense<0.000000e+00> : vector<16x128xf32>
    %12 = tpu.matmul %9, %11, %cst_11 {dimension_numbers = #tpu.dot_dimension_numbers<[1], [0], [0], [1], [0, 0, 1, 1], [], []>} : vector<16x32xbf16>, vector<32x128xbf16>, vector<16x128xf32> -> vector<16x128xf32>
    %13 = arith.addf %7, %12 : vector<16x128xf32>
    %cst_12 = arith.constant 0.000000e+00 : f32
    %14 = vector.broadcast %cst_12 : f32 to vector<16x128xf32>
    %15 = arith.maximumf %13, %14 : vector<16x128xf32>
    %16 = arith.truncf %15 : vector<16x128xf32> to vector<16x128xbf16>
    %c0_13 = arith.constant 0 : index
    %c0_14 = arith.constant 0 : index
    %c0_15 = arith.constant 0 : index
    %17 = vector.load %arg15[%c0_13, %c0_14, %c0_15] : memref<8x16x128xbf16, #tpu.memory_space<vmem>>, vector<1x16x128xbf16>
    %18 = vector.shape_cast %17 : vector<1x16x128xbf16> to vector<16x128xbf16>
    %19 = vector.shape_cast %16 : vector<16x128xbf16> to vector<1x16x128xbf16>
    tpu.vector_store %arg15[%c0_13, %c0_14, %c0_15], %19 {strides = array<i32>} : memref<8x16x128xbf16, #tpu.memory_space<vmem>>, vector<1x16x128xbf16>,
    %c0_16 = arith.constant 0 : index
    %c0_17 = arith.constant 0 : index
    %20 = vector.load %arg4[%c0_16, %c0_17] : memref<1x128xf32, #tpu.memory_space<vmem>>, vector<1x128xf32>
    %c1_18 = arith.constant 1 : index
    %c0_19 = arith.constant 0 : index
    %c0_20 = arith.constant 0 : index
    %21 = vector.load %arg1[%c1_18, %c0_19, %c0_20] : memref<16x16x32xbf16, #tpu.memory_space<vmem>>, vector<1x16x32xbf16>
    %22 = vector.shape_cast %21 : vector<1x16x32xbf16> to vector<16x32xbf16>
    %c0_21 = arith.constant 0 : index
    %c0_22 = arith.constant 0 : index
    %c0_23 = arith.constant 0 : index
    %23 = vector.load %arg3[%c0_21, %c0_22, %c0_23] : memref<3x32x128xbf16, #tpu.memory_space<vmem>>, vector<1x32x128xbf16>
    %24 = vector.shape_cast %23 : vector<1x32x128xbf16> to vector<32x128xbf16>
    %cst_24 = arith.constant dense<0.000000e+00> : vector<16x128xf32>
    %25 = tpu.matmul %22, %24, %cst_24 {dimension_numbers = #tpu.dot_dimension_numbers<[1], [0], [0], [1], [0, 0, 1, 1], [], []>} : vector<16x32xbf16>, vector<32x128xbf16>, vector<16x128xf32> -> vector<16x128xf32>
    %26 = vector.broadcast %20 : vector<1x128xf32> to vector<16x128xf32>
    %27 = arith.addf %26, %25 : vector<16x128xf32>
    %c2_25 = arith.constant 2 : index
    %c0_26 = arith.constant 0 : index
    %c0_27 = arith.constant 0 : index
    %28 = vector.load %arg1[%c2_25, %c0_26, %c0_27] : memref<16x16x32xbf16, #tpu.memory_space<vmem>>, vector<1x16x32xbf16>
    %29 = vector.shape_cast %28 : vector<1x16x32xbf16> to vector<16x32xbf16>
    %c1_28 = arith.constant 1 : index
    %c0_29 = arith.constant 0 : index
    %c0_30 = arith.constant 0 : index
    %30 = vector.load %arg3[%c1_28, %c0_29, %c0_30] : memref<3x32x128xbf16, #tpu.memory_space<vmem>>, vector<1x32x128xbf16>
    %31 = vector.shape_cast %30 : vector<1x32x128xbf16> to vector<32x128xbf16>
    %cst_31 = arith.constant dense<0.000000e+00> : vector<16x128xf32>
    %32 = tpu.matmul %29, %31, %cst_31 {dimension_numbers = #tpu.dot_dimension_numbers<[1], [0], [0], [1], [0, 0, 1, 1], [], []>} : vector<16x32xbf16>, vector<32x128xbf16>, vector<16x128xf32> -> vector<16x128xf32>
    %33 = arith.addf %27, %32 : vector<16x128xf32>
    %c3 = arith.constant 3 : index
    %c0_32 = arith.constant 0 : index
    %c0_33 = arith.constant 0 : index
    %34 = vector.load %arg1[%c3, %c0_32, %c0_33] : memref<16x16x32xbf16, #tpu.memory_space<vmem>>, vector<1x16x32xbf16>
    %35 = vector.shape_cast %34 : vector<1x16x32xbf16> to vector<16x32xbf16>
    %c2_34 = arith.constant 2 : index
    %c0_35 = arith.constant 0 : index
    %c0_36 = arith.constant 0 : index
    %36 = vector.load %arg3[%c2_34, %c0_35, %c0_36] : memref<3x32x128xbf16, #tpu.memory_space<vmem>>, vector<1x32x128xbf16>
    %37 = vector.shape_cast %36 : vector<1x32x128xbf16> to vector<32x128xbf16>
    %cst_37 = arith.constant dense<0.000000e+00> : vector<16x128xf32>
    %38 = tpu.matmul %35, %37, %cst_37 {dimension_numbers = #tpu.dot_dimension_numbers<[1], [0], [0], [1], [0, 0, 1, 1], [], []>} : vector<16x32xbf16>, vector<32x128xbf16>, vector<16x128xf32> -> vector<16x128xf32>
    %39 = arith.addf %33, %38 : vector<16x128xf32>
    %cst_38 = arith.constant 0.000000e+00 : f32
    %40 = vector.broadcast %cst_38 : f32 to vector<16x128xf32>
    %41 = arith.maximumf %39, %40 : vector<16x128xf32>
    %42 = arith.truncf %41 : vector<16x128xf32> to vector<16x128xbf16>
    %c1_39 = arith.constant 1 : index
    %c0_40 = arith.constant 0 : index
    %c0_41 = arith.constant 0 : index
    %43 = vector.load %arg15[%c1_39, %c0_40, %c0_41] : memref<8x16x128xbf16, #tpu.memory_space<vmem>>, vector<1x16x128xbf16>
    %44 = vector.shape_cast %43 : vector<1x16x128xbf16> to vector<16x128xbf16>
    %45 = vector.shape_cast %42 : vector<16x128xbf16> to vector<1x16x128xbf16>
    tpu.vector_store %arg15[%c1_39, %c0_40, %c0_41], %45 {strides = array<i32>} : memref<8x16x128xbf16, #tpu.memory_space<vmem>>, vector<1x16x128xbf16>,
    %c0_42 = arith.constant 0 : index
    %c0_43 = arith.constant 0 : index
    %46 = vector.load %arg4[%c0_42, %c0_43] : memref<1x128xf32, #tpu.memory_space<vmem>>, vector<1x128xf32>
    %c3_44 = arith.constant 3 : index
    %c0_45 = arith.constant 0 : index
    %c0_46 = arith.constant 0 : index
    %47 = vector.load %arg1[%c3_44, %c0_45, %c0_46] : memref<16x16x32xbf16, #tpu.memory_space<vmem>>, vector<1x16x32xbf16>
    %48 = vector.shape_cast %47 : vector<1x16x32xbf16> to vector<16x32xbf16>
    %c0_47 = arith.constant 0 : index
    %c0_48 = arith.constant 0 : index
    %c0_49 = arith.constant 0 : index
    %49 = vector.load %arg3[%c0_47, %c0_48, %c0_49] : memref<3x32x128xbf16, #tpu.memory_space<vmem>>, vector<1x32x128xbf16>
    %50 = vector.shape_cast %49 : vector<1x32x128xbf16> to vector<32x128xbf16>
    %cst_50 = arith.constant dense<0.000000e+00> : vector<16x128xf32>
    %51 = tpu.matmul %48, %50, %cst_50 {dimension_numbers = #tpu.dot_dimension_numbers<[1], [0], [0], [1], [0, 0, 1, 1], [], []>} : vector<16x32xbf16>, vector<32x128xbf16>, vector<16x128xf32> -> vector<16x128xf32>
    %52 = vector.broadcast %46 : vector<1x128xf32> to vector<16x128xf32>
    %53 = arith.addf %52, %51 : vector<16x128xf32>
    %c4 = arith.constant 4 : index
    %c0_51 = arith.constant 0 : index
    %c0_52 = arith.constant 0 : index
    %54 = vector.load %arg1[%c4, %c0_51, %c0_52] : memref<16x16x32xbf16, #tpu.memory_space<vmem>>, vector<1x16x32xbf16>
    %55 = vector.shape_cast %54 : vector<1x16x32xbf16> to vector<16x32xbf16>
    %c1_53 = arith.constant 1 : index
    %c0_54 = arith.constant 0 : index
    %c0_55 = arith.constant 0 : index
    %56 = vector.load %arg3[%c1_53, %c0_54, %c0_55] : memref<3x32x128xbf16, #tpu.memory_space<vmem>>, vector<1x32x128xbf16>
    %57 = vector.shape_cast %56 : vector<1x32x128xbf16> to vector<32x128xbf16>
    %cst_56 = arith.constant dense<0.000000e+00> : vector<16x128xf32>
    %58 = tpu.matmul %55, %57, %cst_56 {dimension_numbers = #tpu.dot_dimension_numbers<[1], [0], [0], [1], [0, 0, 1, 1], [], []>} : vector<16x32xbf16>, vector<32x128xbf16>, vector<16x128xf32> -> vector<16x128xf32>
    %59 = arith.addf %53, %58 : vector<16x128xf32>
    %c5 = arith.constant 5 : index
    %c0_57 = arith.constant 0 : index
    %c0_58 = arith.constant 0 : index
    %60 = vector.load %arg1[%c5, %c0_57, %c0_58] : memref<16x16x32xbf16, #tpu.memory_space<vmem>>, vector<1x16x32xbf16>
    %61 = vector.shape_cast %60 : vector<1x16x32xbf16> to vector<16x32xbf16>
    %c2_59 = arith.constant 2 : index
    %c0_60 = arith.constant 0 : index
    %c0_61 = arith.constant 0 : index
    %62 = vector.load %arg3[%c2_59, %c0_60, %c0_61] : memref<3x32x128xbf16, #tpu.memory_space<vmem>>, vector<1x32x128xbf16>
    %63 = vector.shape_cast %62 : vector<1x32x128xbf16> to vector<32x128xbf16>
    %cst_62 = arith.constant dense<0.000000e+00> : vector<16x128xf32>
    %64 = tpu.matmul %61, %63, %cst_62 {dimension_numbers = #tpu.dot_dimension_numbers<[1], [0], [0], [1], [0, 0, 1, 1], [], []>} : vector<16x32xbf16>, vector<32x128xbf16>, vector<16x128xf32> -> vector<16x128xf32>
    %65 = arith.addf %59, %64 : vector<16x128xf32>
    %cst_63 = arith.constant 0.000000e+00 : f32
    %66 = vector.broadcast %cst_63 : f32 to vector<16x128xf32>
    %67 = arith.maximumf %65, %66 : vector<16x128xf32>
    %68 = arith.truncf %67 : vector<16x128xf32> to vector<16x128xbf16>
    %c2_64 = arith.constant 2 : index
    %c0_65 = arith.constant 0 : index
    %c0_66 = arith.constant 0 : index
    %69 = vector.load %arg15[%c2_64, %c0_65, %c0_66] : memref<8x16x128xbf16, #tpu.memory_space<vmem>>, vector<1x16x128xbf16>
    %70 = vector.shape_cast %69 : vector<1x16x128xbf16> to vector<16x128xbf16>
    %71 = vector.shape_cast %68 : vector<16x128xbf16> to vector<1x16x128xbf16>
    tpu.vector_store %arg15[%c2_64, %c0_65, %c0_66], %71 {strides = array<i32>} : memref<8x16x128xbf16, #tpu.memory_space<vmem>>, vector<1x16x128xbf16>,
    %c0_67 = arith.constant 0 : index
    %c0_68 = arith.constant 0 : index
    %72 = vector.load %arg4[%c0_67, %c0_68] : memref<1x128xf32, #tpu.memory_space<vmem>>, vector<1x128xf32>
    %c5_69 = arith.constant 5 : index
    %c0_70 = arith.constant 0 : index
    %c0_71 = arith.constant 0 : index
    %73 = vector.load %arg1[%c5_69, %c0_70, %c0_71] : memref<16x16x32xbf16, #tpu.memory_space<vmem>>, vector<1x16x32xbf16>
    %74 = vector.shape_cast %73 : vector<1x16x32xbf16> to vector<16x32xbf16>
    %c0_72 = arith.constant 0 : index
    %c0_73 = arith.constant 0 : index
    %c0_74 = arith.constant 0 : index
    %75 = vector.load %arg3[%c0_72, %c0_73, %c0_74] : memref<3x32x128xbf16, #tpu.memory_space<vmem>>, vector<1x32x128xbf16>
    %76 = vector.shape_cast %75 : vector<1x32x128xbf16> to vector<32x128xbf16>
    %cst_75 = arith.constant dense<0.000000e+00> : vector<16x128xf32>
    %77 = tpu.matmul %74, %76, %cst_75 {dimension_numbers = #tpu.dot_dimension_numbers<[1], [0], [0], [1], [0, 0, 1, 1], [], []>} : vector<16x32xbf16>, vector<32x128xbf16>, vector<16x128xf32> -> vector<16x128xf32>
    %78 = vector.broadcast %72 : vector<1x128xf32> to vector<16x128xf32>
    %79 = arith.addf %78, %77 : vector<16x128xf32>
    %c6 = arith.constant 6 : index
    %c0_76 = arith.constant 0 : index
    %c0_77 = arith.constant 0 : index
    %80 = vector.load %arg1[%c6, %c0_76, %c0_77] : memref<16x16x32xbf16, #tpu.memory_space<vmem>>, vector<1x16x32xbf16>
    %81 = vector.shape_cast %80 : vector<1x16x32xbf16> to vector<16x32xbf16>
    %c1_78 = arith.constant 1 : index
    %c0_79 = arith.constant 0 : index
    %c0_80 = arith.constant 0 : index
    %82 = vector.load %arg3[%c1_78, %c0_79, %c0_80] : memref<3x32x128xbf16, #tpu.memory_space<vmem>>, vector<1x32x128xbf16>
    %83 = vector.shape_cast %82 : vector<1x32x128xbf16> to vector<32x128xbf16>
    %cst_81 = arith.constant dense<0.000000e+00> : vector<16x128xf32>
    %84 = tpu.matmul %81, %83, %cst_81 {dimension_numbers = #tpu.dot_dimension_numbers<[1], [0], [0], [1], [0, 0, 1, 1], [], []>} : vector<16x32xbf16>, vector<32x128xbf16>, vector<16x128xf32> -> vector<16x128xf32>
    %85 = arith.addf %79, %84 : vector<16x128xf32>
    %c7 = arith.constant 7 : index
    %c0_82 = arith.constant 0 : index
    %c0_83 = arith.constant 0 : index
    %86 = vector.load %arg1[%c7, %c0_82, %c0_83] : memref<16x16x32xbf16, #tpu.memory_space<vmem>>, vector<1x16x32xbf16>
    %87 = vector.shape_cast %86 : vector<1x16x32xbf16> to vector<16x32xbf16>
    %c2_84 = arith.constant 2 : index
    %c0_85 = arith.constant 0 : index
    %c0_86 = arith.constant 0 : index
    %88 = vector.load %arg3[%c2_84, %c0_85, %c0_86] : memref<3x32x128xbf16, #tpu.memory_space<vmem>>, vector<1x32x128xbf16>
    %89 = vector.shape_cast %88 : vector<1x32x128xbf16> to vector<32x128xbf16>
    %cst_87 = arith.constant dense<0.000000e+00> : vector<16x128xf32>
    %90 = tpu.matmul %87, %89, %cst_87 {dimension_numbers = #tpu.dot_dimension_numbers<[1], [0], [0], [1], [0, 0, 1, 1], [], []>} : vector<16x32xbf16>, vector<32x128xbf16>, vector<16x128xf32> -> vector<16x128xf32>
    %91 = arith.addf %85, %90 : vector<16x128xf32>
    %cst_88 = arith.constant 0.000000e+00 : f32
    %92 = vector.broadcast %cst_88 : f32 to vector<16x128xf32>
    %93 = arith.maximumf %91, %92 : vector<16x128xf32>
    %94 = arith.truncf %93 : vector<16x128xf32> to vector<16x128xbf16>
    %c3_89 = arith.constant 3 : index
    %c0_90 = arith.constant 0 : index
    %c0_91 = arith.constant 0 : index
    %95 = vector.load %arg15[%c3_89, %c0_90, %c0_91] : memref<8x16x128xbf16, #tpu.memory_space<vmem>>, vector<1x16x128xbf16>
    %96 = vector.shape_cast %95 : vector<1x16x128xbf16> to vector<16x128xbf16>
    %97 = vector.shape_cast %94 : vector<16x128xbf16> to vector<1x16x128xbf16>
    tpu.vector_store %arg15[%c3_89, %c0_90, %c0_91], %97 {strides = array<i32>} : memref<8x16x128xbf16, #tpu.memory_space<vmem>>, vector<1x16x128xbf16>,
    %c0_92 = arith.constant 0 : index
    %c0_93 = arith.constant 0 : index
    %98 = vector.load %arg4[%c0_92, %c0_93] : memref<1x128xf32, #tpu.memory_space<vmem>>, vector<1x128xf32>
    %c7_94 = arith.constant 7 : index
    %c0_95 = arith.constant 0 : index
    %c0_96 = arith.constant 0 : index
    %99 = vector.load %arg1[%c7_94, %c0_95, %c0_96] : memref<16x16x32xbf16, #tpu.memory_space<vmem>>, vector<1x16x32xbf16>
    %100 = vector.shape_cast %99 : vector<1x16x32xbf16> to vector<16x32xbf16>
    %c0_97 = arith.constant 0 : index
    %c0_98 = arith.constant 0 : index
    %c0_99 = arith.constant 0 : index
    %101 = vector.load %arg3[%c0_97, %c0_98, %c0_99] : memref<3x32x128xbf16, #tpu.memory_space<vmem>>, vector<1x32x128xbf16>
    %102 = vector.shape_cast %101 : vector<1x32x128xbf16> to vector<32x128xbf16>
    %cst_100 = arith.constant dense<0.000000e+00> : vector<16x128xf32>
    %103 = tpu.matmul %100, %102, %cst_100 {dimension_numbers = #tpu.dot_dimension_numbers<[1], [0], [0], [1], [0, 0, 1, 1], [], []>} : vector<16x32xbf16>, vector<32x128xbf16>, vector<16x128xf32> -> vector<16x128xf32>
    %104 = vector.broadcast %98 : vector<1x128xf32> to vector<16x128xf32>
    %105 = arith.addf %104, %103 : vector<16x128xf32>
    %c8 = arith.constant 8 : index
    %c0_101 = arith.constant 0 : index
    %c0_102 = arith.constant 0 : index
    %106 = vector.load %arg1[%c8, %c0_101, %c0_102] : memref<16x16x32xbf16, #tpu.memory_space<vmem>>, vector<1x16x32xbf16>
    %107 = vector.shape_cast %106 : vector<1x16x32xbf16> to vector<16x32xbf16>
    %c1_103 = arith.constant 1 : index
    %c0_104 = arith.constant 0 : index
    %c0_105 = arith.constant 0 : index
    %108 = vector.load %arg3[%c1_103, %c0_104, %c0_105] : memref<3x32x128xbf16, #tpu.memory_space<vmem>>, vector<1x32x128xbf16>
    %109 = vector.shape_cast %108 : vector<1x32x128xbf16> to vector<32x128xbf16>
    %cst_106 = arith.constant dense<0.000000e+00> : vector<16x128xf32>
    %110 = tpu.matmul %107, %109, %cst_106 {dimension_numbers = #tpu.dot_dimension_numbers<[1], [0], [0], [1], [0, 0, 1, 1], [], []>} : vector<16x32xbf16>, vector<32x128xbf16>, vector<16x128xf32> -> vector<16x128xf32>
    %111 = arith.addf %105, %110 : vector<16x128xf32>
    %c9 = arith.constant 9 : index
    %c0_107 = arith.constant 0 : index
    %c0_108 = arith.constant 0 : index
    %112 = vector.load %arg1[%c9, %c0_107, %c0_108] : memref<16x16x32xbf16, #tpu.memory_space<vmem>>, vector<1x16x32xbf16>
    %113 = vector.shape_cast %112 : vector<1x16x32xbf16> to vector<16x32xbf16>
    %c2_109 = arith.constant 2 : index
    %c0_110 = arith.constant 0 : index
    %c0_111 = arith.constant 0 : index
    %114 = vector.load %arg3[%c2_109, %c0_110, %c0_111] : memref<3x32x128xbf16, #tpu.memory_space<vmem>>, vector<1x32x128xbf16>
    %115 = vector.shape_cast %114 : vector<1x32x128xbf16> to vector<32x128xbf16>
    %cst_112 = arith.constant dense<0.000000e+00> : vector<16x128xf32>
    %116 = tpu.matmul %113, %115, %cst_112 {dimension_numbers = #tpu.dot_dimension_numbers<[1], [0], [0], [1], [0, 0, 1, 1], [], []>} : vector<16x32xbf16>, vector<32x128xbf16>, vector<16x128xf32> -> vector<16x128xf32>
    %117 = arith.addf %111, %116 : vector<16x128xf32>
    %cst_113 = arith.constant 0.000000e+00 : f32
    %118 = vector.broadcast %cst_113 : f32 to vector<16x128xf32>
    %119 = arith.maximumf %117, %118 : vector<16x128xf32>
    %120 = arith.truncf %119 : vector<16x128xf32> to vector<16x128xbf16>
    %c4_114 = arith.constant 4 : index
    %c0_115 = arith.constant 0 : index
    %c0_116 = arith.constant 0 : index
    %121 = vector.load %arg15[%c4_114, %c0_115, %c0_116] : memref<8x16x128xbf16, #tpu.memory_space<vmem>>, vector<1x16x128xbf16>
    %122 = vector.shape_cast %121 : vector<1x16x128xbf16> to vector<16x128xbf16>
    %123 = vector.shape_cast %120 : vector<16x128xbf16> to vector<1x16x128xbf16>
    tpu.vector_store %arg15[%c4_114, %c0_115, %c0_116], %123 {strides = array<i32>} : memref<8x16x128xbf16, #tpu.memory_space<vmem>>, vector<1x16x128xbf16>,
    %c0_117 = arith.constant 0 : index
    %c0_118 = arith.constant 0 : index
    %124 = vector.load %arg4[%c0_117, %c0_118] : memref<1x128xf32, #tpu.memory_space<vmem>>, vector<1x128xf32>
    %c9_119 = arith.constant 9 : index
    %c0_120 = arith.constant 0 : index
    %c0_121 = arith.constant 0 : index
    %125 = vector.load %arg1[%c9_119, %c0_120, %c0_121] : memref<16x16x32xbf16, #tpu.memory_space<vmem>>, vector<1x16x32xbf16>
    %126 = vector.shape_cast %125 : vector<1x16x32xbf16> to vector<16x32xbf16>
    %c0_122 = arith.constant 0 : index
    %c0_123 = arith.constant 0 : index
    %c0_124 = arith.constant 0 : index
    %127 = vector.load %arg3[%c0_122, %c0_123, %c0_124] : memref<3x32x128xbf16, #tpu.memory_space<vmem>>, vector<1x32x128xbf16>
    %128 = vector.shape_cast %127 : vector<1x32x128xbf16> to vector<32x128xbf16>
    %cst_125 = arith.constant dense<0.000000e+00> : vector<16x128xf32>
    %129 = tpu.matmul %126, %128, %cst_125 {dimension_numbers = #tpu.dot_dimension_numbers<[1], [0], [0], [1], [0, 0, 1, 1], [], []>} : vector<16x32xbf16>, vector<32x128xbf16>, vector<16x128xf32> -> vector<16x128xf32>
    %130 = vector.broadcast %124 : vector<1x128xf32> to vector<16x128xf32>
    %131 = arith.addf %130, %129 : vector<16x128xf32>
    %c10 = arith.constant 10 : index
    %c0_126 = arith.constant 0 : index
    %c0_127 = arith.constant 0 : index
    %132 = vector.load %arg1[%c10, %c0_126, %c0_127] : memref<16x16x32xbf16, #tpu.memory_space<vmem>>, vector<1x16x32xbf16>
    %133 = vector.shape_cast %132 : vector<1x16x32xbf16> to vector<16x32xbf16>
    %c1_128 = arith.constant 1 : index
    %c0_129 = arith.constant 0 : index
    %c0_130 = arith.constant 0 : index
    %134 = vector.load %arg3[%c1_128, %c0_129, %c0_130] : memref<3x32x128xbf16, #tpu.memory_space<vmem>>, vector<1x32x128xbf16>
    %135 = vector.shape_cast %134 : vector<1x32x128xbf16> to vector<32x128xbf16>
    %cst_131 = arith.constant dense<0.000000e+00> : vector<16x128xf32>
    %136 = tpu.matmul %133, %135, %cst_131 {dimension_numbers = #tpu.dot_dimension_numbers<[1], [0], [0], [1], [0, 0, 1, 1], [], []>} : vector<16x32xbf16>, vector<32x128xbf16>, vector<16x128xf32> -> vector<16x128xf32>
    %137 = arith.addf %131, %136 : vector<16x128xf32>
    %c11 = arith.constant 11 : index
    %c0_132 = arith.constant 0 : index
    %c0_133 = arith.constant 0 : index
    %138 = vector.load %arg1[%c11, %c0_132, %c0_133] : memref<16x16x32xbf16, #tpu.memory_space<vmem>>, vector<1x16x32xbf16>
    %139 = vector.shape_cast %138 : vector<1x16x32xbf16> to vector<16x32xbf16>
    %c2_134 = arith.constant 2 : index
    %c0_135 = arith.constant 0 : index
    %c0_136 = arith.constant 0 : index
    %140 = vector.load %arg3[%c2_134, %c0_135, %c0_136] : memref<3x32x128xbf16, #tpu.memory_space<vmem>>, vector<1x32x128xbf16>
    %141 = vector.shape_cast %140 : vector<1x32x128xbf16> to vector<32x128xbf16>
    %cst_137 = arith.constant dense<0.000000e+00> : vector<16x128xf32>
    %142 = tpu.matmul %139, %141, %cst_137 {dimension_numbers = #tpu.dot_dimension_numbers<[1], [0], [0], [1], [0, 0, 1, 1], [], []>} : vector<16x32xbf16>, vector<32x128xbf16>, vector<16x128xf32> -> vector<16x128xf32>
    %143 = arith.addf %137, %142 : vector<16x128xf32>
    %cst_138 = arith.constant 0.000000e+00 : f32
    %144 = vector.broadcast %cst_138 : f32 to vector<16x128xf32>
    %145 = arith.maximumf %143, %144 : vector<16x128xf32>
    %146 = arith.truncf %145 : vector<16x128xf32> to vector<16x128xbf16>
    %c5_139 = arith.constant 5 : index
    %c0_140 = arith.constant 0 : index
    %c0_141 = arith.constant 0 : index
    %147 = vector.load %arg15[%c5_139, %c0_140, %c0_141] : memref<8x16x128xbf16, #tpu.memory_space<vmem>>, vector<1x16x128xbf16>
    %148 = vector.shape_cast %147 : vector<1x16x128xbf16> to vector<16x128xbf16>
    %149 = vector.shape_cast %146 : vector<16x128xbf16> to vector<1x16x128xbf16>
    tpu.vector_store %arg15[%c5_139, %c0_140, %c0_141], %149 {strides = array<i32>} : memref<8x16x128xbf16, #tpu.memory_space<vmem>>, vector<1x16x128xbf16>,
    %c0_142 = arith.constant 0 : index
    %c0_143 = arith.constant 0 : index
    %150 = vector.load %arg4[%c0_142, %c0_143] : memref<1x128xf32, #tpu.memory_space<vmem>>, vector<1x128xf32>
    %c11_144 = arith.constant 11 : index
    %c0_145 = arith.constant 0 : index
    %c0_146 = arith.constant 0 : index
    %151 = vector.load %arg1[%c11_144, %c0_145, %c0_146] : memref<16x16x32xbf16, #tpu.memory_space<vmem>>, vector<1x16x32xbf16>
    %152 = vector.shape_cast %151 : vector<1x16x32xbf16> to vector<16x32xbf16>
    %c0_147 = arith.constant 0 : index
    %c0_148 = arith.constant 0 : index
    %c0_149 = arith.constant 0 : index
    %153 = vector.load %arg3[%c0_147, %c0_148, %c0_149] : memref<3x32x128xbf16, #tpu.memory_space<vmem>>, vector<1x32x128xbf16>
    %154 = vector.shape_cast %153 : vector<1x32x128xbf16> to vector<32x128xbf16>
    %cst_150 = arith.constant dense<0.000000e+00> : vector<16x128xf32>
    %155 = tpu.matmul %152, %154, %cst_150 {dimension_numbers = #tpu.dot_dimension_numbers<[1], [0], [0], [1], [0, 0, 1, 1], [], []>} : vector<16x32xbf16>, vector<32x128xbf16>, vector<16x128xf32> -> vector<16x128xf32>
    %156 = vector.broadcast %150 : vector<1x128xf32> to vector<16x128xf32>
    %157 = arith.addf %156, %155 : vector<16x128xf32>
    %c12 = arith.constant 12 : index
    %c0_151 = arith.constant 0 : index
    %c0_152 = arith.constant 0 : index
    %158 = vector.load %arg1[%c12, %c0_151, %c0_152] : memref<16x16x32xbf16, #tpu.memory_space<vmem>>, vector<1x16x32xbf16>
    %159 = vector.shape_cast %158 : vector<1x16x32xbf16> to vector<16x32xbf16>
    %c1_153 = arith.constant 1 : index
    %c0_154 = arith.constant 0 : index
    %c0_155 = arith.constant 0 : index
    %160 = vector.load %arg3[%c1_153, %c0_154, %c0_155] : memref<3x32x128xbf16, #tpu.memory_space<vmem>>, vector<1x32x128xbf16>
    %161 = vector.shape_cast %160 : vector<1x32x128xbf16> to vector<32x128xbf16>
    %cst_156 = arith.constant dense<0.000000e+00> : vector<16x128xf32>
    %162 = tpu.matmul %159, %161, %cst_156 {dimension_numbers = #tpu.dot_dimension_numbers<[1], [0], [0], [1], [0, 0, 1, 1], [], []>} : vector<16x32xbf16>, vector<32x128xbf16>, vector<16x128xf32> -> vector<16x128xf32>
    %163 = arith.addf %157, %162 : vector<16x128xf32>
    %c13 = arith.constant 13 : index
    %c0_157 = arith.constant 0 : index
    %c0_158 = arith.constant 0 : index
    %164 = vector.load %arg1[%c13, %c0_157, %c0_158] : memref<16x16x32xbf16, #tpu.memory_space<vmem>>, vector<1x16x32xbf16>
    %165 = vector.shape_cast %164 : vector<1x16x32xbf16> to vector<16x32xbf16>
    %c2_159 = arith.constant 2 : index
    %c0_160 = arith.constant 0 : index
    %c0_161 = arith.constant 0 : index
    %166 = vector.load %arg3[%c2_159, %c0_160, %c0_161] : memref<3x32x128xbf16, #tpu.memory_space<vmem>>, vector<1x32x128xbf16>
    %167 = vector.shape_cast %166 : vector<1x32x128xbf16> to vector<32x128xbf16>
    %cst_162 = arith.constant dense<0.000000e+00> : vector<16x128xf32>
    %168 = tpu.matmul %165, %167, %cst_162 {dimension_numbers = #tpu.dot_dimension_numbers<[1], [0], [0], [1], [0, 0, 1, 1], [], []>} : vector<16x32xbf16>, vector<32x128xbf16>, vector<16x128xf32> -> vector<16x128xf32>
    %169 = arith.addf %163, %168 : vector<16x128xf32>
    %cst_163 = arith.constant 0.000000e+00 : f32
    %170 = vector.broadcast %cst_163 : f32 to vector<16x128xf32>
    %171 = arith.maximumf %169, %170 : vector<16x128xf32>
    %172 = arith.truncf %171 : vector<16x128xf32> to vector<16x128xbf16>
    %c6_164 = arith.constant 6 : index
    %c0_165 = arith.constant 0 : index
    %c0_166 = arith.constant 0 : index
    %173 = vector.load %arg15[%c6_164, %c0_165, %c0_166] : memref<8x16x128xbf16, #tpu.memory_space<vmem>>, vector<1x16x128xbf16>
    %174 = vector.shape_cast %173 : vector<1x16x128xbf16> to vector<16x128xbf16>
    %175 = vector.shape_cast %172 : vector<16x128xbf16> to vector<1x16x128xbf16>
    tpu.vector_store %arg15[%c6_164, %c0_165, %c0_166], %175 {strides = array<i32>} : memref<8x16x128xbf16, #tpu.memory_space<vmem>>, vector<1x16x128xbf16>,
    %c0_167 = arith.constant 0 : index
    %c0_168 = arith.constant 0 : index
    %176 = vector.load %arg4[%c0_167, %c0_168] : memref<1x128xf32, #tpu.memory_space<vmem>>, vector<1x128xf32>
    %c13_169 = arith.constant 13 : index
    %c0_170 = arith.constant 0 : index
    %c0_171 = arith.constant 0 : index
    %177 = vector.load %arg1[%c13_169, %c0_170, %c0_171] : memref<16x16x32xbf16, #tpu.memory_space<vmem>>, vector<1x16x32xbf16>
    %178 = vector.shape_cast %177 : vector<1x16x32xbf16> to vector<16x32xbf16>
    %c0_172 = arith.constant 0 : index
    %c0_173 = arith.constant 0 : index
    %c0_174 = arith.constant 0 : index
    %179 = vector.load %arg3[%c0_172, %c0_173, %c0_174] : memref<3x32x128xbf16, #tpu.memory_space<vmem>>, vector<1x32x128xbf16>
    %180 = vector.shape_cast %179 : vector<1x32x128xbf16> to vector<32x128xbf16>
    %cst_175 = arith.constant dense<0.000000e+00> : vector<16x128xf32>
    %181 = tpu.matmul %178, %180, %cst_175 {dimension_numbers = #tpu.dot_dimension_numbers<[1], [0], [0], [1], [0, 0, 1, 1], [], []>} : vector<16x32xbf16>, vector<32x128xbf16>, vector<16x128xf32> -> vector<16x128xf32>
    %182 = vector.broadcast %176 : vector<1x128xf32> to vector<16x128xf32>
    %183 = arith.addf %182, %181 : vector<16x128xf32>
    %c14 = arith.constant 14 : index
    %c0_176 = arith.constant 0 : index
    %c0_177 = arith.constant 0 : index
    %184 = vector.load %arg1[%c14, %c0_176, %c0_177] : memref<16x16x32xbf16, #tpu.memory_space<vmem>>, vector<1x16x32xbf16>
    %185 = vector.shape_cast %184 : vector<1x16x32xbf16> to vector<16x32xbf16>
    %c1_178 = arith.constant 1 : index
    %c0_179 = arith.constant 0 : index
    %c0_180 = arith.constant 0 : index
    %186 = vector.load %arg3[%c1_178, %c0_179, %c0_180] : memref<3x32x128xbf16, #tpu.memory_space<vmem>>, vector<1x32x128xbf16>
    %187 = vector.shape_cast %186 : vector<1x32x128xbf16> to vector<32x128xbf16>
    %cst_181 = arith.constant dense<0.000000e+00> : vector<16x128xf32>
    %188 = tpu.matmul %185, %187, %cst_181 {dimension_numbers = #tpu.dot_dimension_numbers<[1], [0], [0], [1], [0, 0, 1, 1], [], []>} : vector<16x32xbf16>, vector<32x128xbf16>, vector<16x128xf32> -> vector<16x128xf32>
    %189 = arith.addf %183, %188 : vector<16x128xf32>
    %c15 = arith.constant 15 : index
    %c0_182 = arith.constant 0 : index
    %c0_183 = arith.constant 0 : index
    %190 = vector.load %arg1[%c15, %c0_182, %c0_183] : memref<16x16x32xbf16, #tpu.memory_space<vmem>>, vector<1x16x32xbf16>
    %191 = vector.shape_cast %190 : vector<1x16x32xbf16> to vector<16x32xbf16>
    %c2_184 = arith.constant 2 : index
    %c0_185 = arith.constant 0 : index
    %c0_186 = arith.constant 0 : index
    %192 = vector.load %arg3[%c2_184, %c0_185, %c0_186] : memref<3x32x128xbf16, #tpu.memory_space<vmem>>, vector<1x32x128xbf16>
    %193 = vector.shape_cast %192 : vector<1x32x128xbf16> to vector<32x128xbf16>
    %cst_187 = arith.constant dense<0.000000e+00> : vector<16x128xf32>
    %194 = tpu.matmul %191, %193, %cst_187 {dimension_numbers = #tpu.dot_dimension_numbers<[1], [0], [0], [1], [0, 0, 1, 1], [], []>} : vector<16x32xbf16>, vector<32x128xbf16>, vector<16x128xf32> -> vector<16x128xf32>
    %195 = arith.addf %189, %194 : vector<16x128xf32>
    %cst_188 = arith.constant 0.000000e+00 : f32
    %196 = vector.broadcast %cst_188 : f32 to vector<16x128xf32>
    %197 = arith.maximumf %195, %196 : vector<16x128xf32>
    %198 = arith.truncf %197 : vector<16x128xf32> to vector<16x128xbf16>
    %c7_189 = arith.constant 7 : index
    %c0_190 = arith.constant 0 : index
    %c0_191 = arith.constant 0 : index
    %199 = vector.load %arg15[%c7_189, %c0_190, %c0_191] : memref<8x16x128xbf16, #tpu.memory_space<vmem>>, vector<1x16x128xbf16>
    %200 = vector.shape_cast %199 : vector<1x16x128xbf16> to vector<16x128xbf16>
    %201 = vector.shape_cast %198 : vector<16x128xbf16> to vector<1x16x128xbf16>
    tpu.vector_store %arg15[%c7_189, %c0_190, %c0_191], %201 {strides = array<i32>} : memref<8x16x128xbf16, #tpu.memory_space<vmem>>, vector<1x16x128xbf16>,
    %c0_192 = arith.constant 0 : index
    %c0_193 = arith.constant 0 : index
    %202 = vector.load %arg8[%c0_192, %c0_193] : memref<1x128xf32, #tpu.memory_space<vmem>>, vector<1x128xf32>
    %c0_194 = arith.constant 0 : index
    %c0_195 = arith.constant 0 : index
    %203 = vector.load %arg6[%c0_194, %c0_195] : memref<1x128xf32, #tpu.memory_space<vmem>>, vector<1x128xf32>
    %c0_196 = arith.constant 0 : index
    %c0_197 = arith.constant 0 : index
    %c0_198 = arith.constant 0 : index
    %204 = vector.load %arg15[%c0_196, %c0_197, %c0_198] : memref<8x16x128xbf16, #tpu.memory_space<vmem>>, vector<1x16x128xbf16>
    %205 = vector.shape_cast %204 : vector<1x16x128xbf16> to vector<16x128xbf16>
    %c1_199 = arith.constant 1 : index
    %c0_200 = arith.constant 0 : index
    %c0_201 = arith.constant 0 : index
    %206 = vector.load %arg5[%c1_199, %c0_200, %c0_201] : memref<3x128x128xbf16, #tpu.memory_space<vmem>>, vector<1x128x128xbf16>
    %207 = vector.shape_cast %206 : vector<1x128x128xbf16> to vector<128x128xbf16>
    %cst_202 = arith.constant dense<0.000000e+00> : vector<16x128xf32>
    %208 = tpu.matmul %205, %207, %cst_202 {dimension_numbers = #tpu.dot_dimension_numbers<[1], [0], [0], [1], [0, 0, 1, 1], [], []>} : vector<16x128xbf16>, vector<128x128xbf16>, vector<16x128xf32> -> vector<16x128xf32>
    %209 = vector.broadcast %203 : vector<1x128xf32> to vector<16x128xf32>
    %210 = arith.addf %209, %208 : vector<16x128xf32>
    %c1_203 = arith.constant 1 : index
    %c0_204 = arith.constant 0 : index
    %c0_205 = arith.constant 0 : index
    %211 = vector.load %arg15[%c1_203, %c0_204, %c0_205] : memref<8x16x128xbf16, #tpu.memory_space<vmem>>, vector<1x16x128xbf16>
    %212 = vector.shape_cast %211 : vector<1x16x128xbf16> to vector<16x128xbf16>
    %c2_206 = arith.constant 2 : index
    %c0_207 = arith.constant 0 : index
    %c0_208 = arith.constant 0 : index
    %213 = vector.load %arg5[%c2_206, %c0_207, %c0_208] : memref<3x128x128xbf16, #tpu.memory_space<vmem>>, vector<1x128x128xbf16>
    %214 = vector.shape_cast %213 : vector<1x128x128xbf16> to vector<128x128xbf16>
    %cst_209 = arith.constant dense<0.000000e+00> : vector<16x128xf32>
    %215 = tpu.matmul %212, %214, %cst_209 {dimension_numbers = #tpu.dot_dimension_numbers<[1], [0], [0], [1], [0, 0, 1, 1], [], []>} : vector<16x128xbf16>, vector<128x128xbf16>, vector<16x128xf32> -> vector<16x128xf32>
    %216 = arith.addf %210, %215 : vector<16x128xf32>
    %cst_210 = arith.constant 0.000000e+00 : f32
    %217 = vector.broadcast %cst_210 : f32 to vector<16x128xf32>
    %218 = arith.maximumf %216, %217 : vector<16x128xf32>
    %219 = arith.truncf %218 : vector<16x128xf32> to vector<16x128xbf16>
    %c0_211 = arith.constant 0 : index
    %c0_212 = arith.constant 0 : index
    %c0_213 = arith.constant 0 : index
    %220 = vector.load %arg7[%c0_211, %c0_212, %c0_213] : memref<4x128x128xbf16, #tpu.memory_space<vmem>>, vector<1x128x128xbf16>
    %221 = vector.shape_cast %220 : vector<1x128x128xbf16> to vector<128x128xbf16>
    %cst_214 = arith.constant dense<0.000000e+00> : vector<16x128xf32>
    %222 = tpu.matmul %219, %221, %cst_214 {dimension_numbers = #tpu.dot_dimension_numbers<[1], [0], [0], [1], [0, 0, 1, 1], [], []>} : vector<16x128xbf16>, vector<128x128xbf16>, vector<16x128xf32> -> vector<16x128xf32>
    %223 = vector.broadcast %202 : vector<1x128xf32> to vector<16x128xf32>
    %224 = arith.addf %223, %222 : vector<16x128xf32>
    %c0_215 = arith.constant 0 : index
    %c0_216 = arith.constant 0 : index
    %225 = vector.load %arg6[%c0_215, %c0_216] : memref<1x128xf32, #tpu.memory_space<vmem>>, vector<1x128xf32>
    %c1_217 = arith.constant 1 : index
    %c0_218 = arith.constant 0 : index
    %c0_219 = arith.constant 0 : index
    %226 = vector.load %arg15[%c1_217, %c0_218, %c0_219] : memref<8x16x128xbf16, #tpu.memory_space<vmem>>, vector<1x16x128xbf16>
    %227 = vector.shape_cast %226 : vector<1x16x128xbf16> to vector<16x128xbf16>
    %c0_220 = arith.constant 0 : index
    %c0_221 = arith.constant 0 : index
    %c0_222 = arith.constant 0 : index
    %228 = vector.load %arg5[%c0_220, %c0_221, %c0_222] : memref<3x128x128xbf16, #tpu.memory_space<vmem>>, vector<1x128x128xbf16>
    %229 = vector.shape_cast %228 : vector<1x128x128xbf16> to vector<128x128xbf16>
    %cst_223 = arith.constant dense<0.000000e+00> : vector<16x128xf32>
    %230 = tpu.matmul %227, %229, %cst_223 {dimension_numbers = #tpu.dot_dimension_numbers<[1], [0], [0], [1], [0, 0, 1, 1], [], []>} : vector<16x128xbf16>, vector<128x128xbf16>, vector<16x128xf32> -> vector<16x128xf32>
    %231 = vector.broadcast %225 : vector<1x128xf32> to vector<16x128xf32>
    %232 = arith.addf %231, %230 : vector<16x128xf32>
    %c2_224 = arith.constant 2 : index
    %c0_225 = arith.constant 0 : index
    %c0_226 = arith.constant 0 : index
    %233 = vector.load %arg15[%c2_224, %c0_225, %c0_226] : memref<8x16x128xbf16, #tpu.memory_space<vmem>>, vector<1x16x128xbf16>
    %234 = vector.shape_cast %233 : vector<1x16x128xbf16> to vector<16x128xbf16>
    %c1_227 = arith.constant 1 : index
    %c0_228 = arith.constant 0 : index
    %c0_229 = arith.constant 0 : index
    %235 = vector.load %arg5[%c1_227, %c0_228, %c0_229] : memref<3x128x128xbf16, #tpu.memory_space<vmem>>, vector<1x128x128xbf16>
    %236 = vector.shape_cast %235 : vector<1x128x128xbf16> to vector<128x128xbf16>
    %cst_230 = arith.constant dense<0.000000e+00> : vector<16x128xf32>
    %237 = tpu.matmul %234, %236, %cst_230 {dimension_numbers = #tpu.dot_dimension_numbers<[1], [0], [0], [1], [0, 0, 1, 1], [], []>} : vector<16x128xbf16>, vector<128x128xbf16>, vector<16x128xf32> -> vector<16x128xf32>
    %238 = arith.addf %232, %237 : vector<16x128xf32>
    %c3_231 = arith.constant 3 : index
    %c0_232 = arith.constant 0 : index
    %c0_233 = arith.constant 0 : index
    %239 = vector.load %arg15[%c3_231, %c0_232, %c0_233] : memref<8x16x128xbf16, #tpu.memory_space<vmem>>, vector<1x16x128xbf16>
    %240 = vector.shape_cast %239 : vector<1x16x128xbf16> to vector<16x128xbf16>
    %c2_234 = arith.constant 2 : index
    %c0_235 = arith.constant 0 : index
    %c0_236 = arith.constant 0 : index
    %241 = vector.load %arg5[%c2_234, %c0_235, %c0_236] : memref<3x128x128xbf16, #tpu.memory_space<vmem>>, vector<1x128x128xbf16>
    %242 = vector.shape_cast %241 : vector<1x128x128xbf16> to vector<128x128xbf16>
    %cst_237 = arith.constant dense<0.000000e+00> : vector<16x128xf32>
    %243 = tpu.matmul %240, %242, %cst_237 {dimension_numbers = #tpu.dot_dimension_numbers<[1], [0], [0], [1], [0, 0, 1, 1], [], []>} : vector<16x128xbf16>, vector<128x128xbf16>, vector<16x128xf32> -> vector<16x128xf32>
    %244 = arith.addf %238, %243 : vector<16x128xf32>
    %cst_238 = arith.constant 0.000000e+00 : f32
    %245 = vector.broadcast %cst_238 : f32 to vector<16x128xf32>
    %246 = arith.maximumf %244, %245 : vector<16x128xf32>
    %247 = arith.truncf %246 : vector<16x128xf32> to vector<16x128xbf16>
    %c1_239 = arith.constant 1 : index
    %c0_240 = arith.constant 0 : index
    %c0_241 = arith.constant 0 : index
    %248 = vector.load %arg7[%c1_239, %c0_240, %c0_241] : memref<4x128x128xbf16, #tpu.memory_space<vmem>>, vector<1x128x128xbf16>
    %249 = vector.shape_cast %248 : vector<1x128x128xbf16> to vector<128x128xbf16>
    %cst_242 = arith.constant dense<0.000000e+00> : vector<16x128xf32>
    %250 = tpu.matmul %247, %249, %cst_242 {dimension_numbers = #tpu.dot_dimension_numbers<[1], [0], [0], [1], [0, 0, 1, 1], [], []>} : vector<16x128xbf16>, vector<128x128xbf16>, vector<16x128xf32> -> vector<16x128xf32>
    %251 = arith.addf %224, %250 : vector<16x128xf32>
    %c0_243 = arith.constant 0 : index
    %c0_244 = arith.constant 0 : index
    %252 = vector.load %arg6[%c0_243, %c0_244] : memref<1x128xf32, #tpu.memory_space<vmem>>, vector<1x128xf32>
    %c3_245 = arith.constant 3 : index
    %c0_246 = arith.constant 0 : index
    %c0_247 = arith.constant 0 : index
    %253 = vector.load %arg15[%c3_245, %c0_246, %c0_247] : memref<8x16x128xbf16, #tpu.memory_space<vmem>>, vector<1x16x128xbf16>
    %254 = vector.shape_cast %253 : vector<1x16x128xbf16> to vector<16x128xbf16>
    %c0_248 = arith.constant 0 : index
    %c0_249 = arith.constant 0 : index
    %c0_250 = arith.constant 0 : index
    %255 = vector.load %arg5[%c0_248, %c0_249, %c0_250] : memref<3x128x128xbf16, #tpu.memory_space<vmem>>, vector<1x128x128xbf16>
    %256 = vector.shape_cast %255 : vector<1x128x128xbf16> to vector<128x128xbf16>
    %cst_251 = arith.constant dense<0.000000e+00> : vector<16x128xf32>
    %257 = tpu.matmul %254, %256, %cst_251 {dimension_numbers = #tpu.dot_dimension_numbers<[1], [0], [0], [1], [0, 0, 1, 1], [], []>} : vector<16x128xbf16>, vector<128x128xbf16>, vector<16x128xf32> -> vector<16x128xf32>
    %258 = vector.broadcast %252 : vector<1x128xf32> to vector<16x128xf32>
    %259 = arith.addf %258, %257 : vector<16x128xf32>
    %c4_252 = arith.constant 4 : index
    %c0_253 = arith.constant 0 : index
    %c0_254 = arith.constant 0 : index
    %260 = vector.load %arg15[%c4_252, %c0_253, %c0_254] : memref<8x16x128xbf16, #tpu.memory_space<vmem>>, vector<1x16x128xbf16>
    %261 = vector.shape_cast %260 : vector<1x16x128xbf16> to vector<16x128xbf16>
    %c1_255 = arith.constant 1 : index
    %c0_256 = arith.constant 0 : index
    %c0_257 = arith.constant 0 : index
    %262 = vector.load %arg5[%c1_255, %c0_256, %c0_257] : memref<3x128x128xbf16, #tpu.memory_space<vmem>>, vector<1x128x128xbf16>
    %263 = vector.shape_cast %262 : vector<1x128x128xbf16> to vector<128x128xbf16>
    %cst_258 = arith.constant dense<0.000000e+00> : vector<16x128xf32>
    %264 = tpu.matmul %261, %263, %cst_258 {dimension_numbers = #tpu.dot_dimension_numbers<[1], [0], [0], [1], [0, 0, 1, 1], [], []>} : vector<16x128xbf16>, vector<128x128xbf16>, vector<16x128xf32> -> vector<16x128xf32>
    %265 = arith.addf %259, %264 : vector<16x128xf32>
    %c5_259 = arith.constant 5 : index
    %c0_260 = arith.constant 0 : index
    %c0_261 = arith.constant 0 : index
    %266 = vector.load %arg15[%c5_259, %c0_260, %c0_261] : memref<8x16x128xbf16, #tpu.memory_space<vmem>>, vector<1x16x128xbf16>
    %267 = vector.shape_cast %266 : vector<1x16x128xbf16> to vector<16x128xbf16>
    %c2_262 = arith.constant 2 : index
    %c0_263 = arith.constant 0 : index
    %c0_264 = arith.constant 0 : index
    %268 = vector.load %arg5[%c2_262, %c0_263, %c0_264] : memref<3x128x128xbf16, #tpu.memory_space<vmem>>, vector<1x128x128xbf16>
    %269 = vector.shape_cast %268 : vector<1x128x128xbf16> to vector<128x128xbf16>
    %cst_265 = arith.constant dense<0.000000e+00> : vector<16x128xf32>
    %270 = tpu.matmul %267, %269, %cst_265 {dimension_numbers = #tpu.dot_dimension_numbers<[1], [0], [0], [1], [0, 0, 1, 1], [], []>} : vector<16x128xbf16>, vector<128x128xbf16>, vector<16x128xf32> -> vector<16x128xf32>
    %271 = arith.addf %265, %270 : vector<16x128xf32>
    %cst_266 = arith.constant 0.000000e+00 : f32
    %272 = vector.broadcast %cst_266 : f32 to vector<16x128xf32>
    %273 = arith.maximumf %271, %272 : vector<16x128xf32>
    %274 = arith.truncf %273 : vector<16x128xf32> to vector<16x128xbf16>
    %c2_267 = arith.constant 2 : index
    %c0_268 = arith.constant 0 : index
    %c0_269 = arith.constant 0 : index
    %275 = vector.load %arg7[%c2_267, %c0_268, %c0_269] : memref<4x128x128xbf16, #tpu.memory_space<vmem>>, vector<1x128x128xbf16>
    %276 = vector.shape_cast %275 : vector<1x128x128xbf16> to vector<128x128xbf16>
    %cst_270 = arith.constant dense<0.000000e+00> : vector<16x128xf32>
    %277 = tpu.matmul %274, %276, %cst_270 {dimension_numbers = #tpu.dot_dimension_numbers<[1], [0], [0], [1], [0, 0, 1, 1], [], []>} : vector<16x128xbf16>, vector<128x128xbf16>, vector<16x128xf32> -> vector<16x128xf32>
    %278 = arith.addf %251, %277 : vector<16x128xf32>
    %c0_271 = arith.constant 0 : index
    %c0_272 = arith.constant 0 : index
    %279 = vector.load %arg6[%c0_271, %c0_272] : memref<1x128xf32, #tpu.memory_space<vmem>>, vector<1x128xf32>
    %c5_273 = arith.constant 5 : index
    %c0_274 = arith.constant 0 : index
    %c0_275 = arith.constant 0 : index
    %280 = vector.load %arg15[%c5_273, %c0_274, %c0_275] : memref<8x16x128xbf16, #tpu.memory_space<vmem>>, vector<1x16x128xbf16>
    %281 = vector.shape_cast %280 : vector<1x16x128xbf16> to vector<16x128xbf16>
    %c0_276 = arith.constant 0 : index
    %c0_277 = arith.constant 0 : index
    %c0_278 = arith.constant 0 : index
    %282 = vector.load %arg5[%c0_276, %c0_277, %c0_278] : memref<3x128x128xbf16, #tpu.memory_space<vmem>>, vector<1x128x128xbf16>
    %283 = vector.shape_cast %282 : vector<1x128x128xbf16> to vector<128x128xbf16>
    %cst_279 = arith.constant dense<0.000000e+00> : vector<16x128xf32>
    %284 = tpu.matmul %281, %283, %cst_279 {dimension_numbers = #tpu.dot_dimension_numbers<[1], [0], [0], [1], [0, 0, 1, 1], [], []>} : vector<16x128xbf16>, vector<128x128xbf16>, vector<16x128xf32> -> vector<16x128xf32>
    %285 = vector.broadcast %279 : vector<1x128xf32> to vector<16x128xf32>
    %286 = arith.addf %285, %284 : vector<16x128xf32>
    %c6_280 = arith.constant 6 : index
    %c0_281 = arith.constant 0 : index
    %c0_282 = arith.constant 0 : index
    %287 = vector.load %arg15[%c6_280, %c0_281, %c0_282] : memref<8x16x128xbf16, #tpu.memory_space<vmem>>, vector<1x16x128xbf16>
    %288 = vector.shape_cast %287 : vector<1x16x128xbf16> to vector<16x128xbf16>
    %c1_283 = arith.constant 1 : index
    %c0_284 = arith.constant 0 : index
    %c0_285 = arith.constant 0 : index
    %289 = vector.load %arg5[%c1_283, %c0_284, %c0_285] : memref<3x128x128xbf16, #tpu.memory_space<vmem>>, vector<1x128x128xbf16>
    %290 = vector.shape_cast %289 : vector<1x128x128xbf16> to vector<128x128xbf16>
    %cst_286 = arith.constant dense<0.000000e+00> : vector<16x128xf32>
    %291 = tpu.matmul %288, %290, %cst_286 {dimension_numbers = #tpu.dot_dimension_numbers<[1], [0], [0], [1], [0, 0, 1, 1], [], []>} : vector<16x128xbf16>, vector<128x128xbf16>, vector<16x128xf32> -> vector<16x128xf32>
    %292 = arith.addf %286, %291 : vector<16x128xf32>
    %c7_287 = arith.constant 7 : index
    %c0_288 = arith.constant 0 : index
    %c0_289 = arith.constant 0 : index
    %293 = vector.load %arg15[%c7_287, %c0_288, %c0_289] : memref<8x16x128xbf16, #tpu.memory_space<vmem>>, vector<1x16x128xbf16>
    %294 = vector.shape_cast %293 : vector<1x16x128xbf16> to vector<16x128xbf16>
    %c2_290 = arith.constant 2 : index
    %c0_291 = arith.constant 0 : index
    %c0_292 = arith.constant 0 : index
    %295 = vector.load %arg5[%c2_290, %c0_291, %c0_292] : memref<3x128x128xbf16, #tpu.memory_space<vmem>>, vector<1x128x128xbf16>
    %296 = vector.shape_cast %295 : vector<1x128x128xbf16> to vector<128x128xbf16>
    %cst_293 = arith.constant dense<0.000000e+00> : vector<16x128xf32>
    %297 = tpu.matmul %294, %296, %cst_293 {dimension_numbers = #tpu.dot_dimension_numbers<[1], [0], [0], [1], [0, 0, 1, 1], [], []>} : vector<16x128xbf16>, vector<128x128xbf16>, vector<16x128xf32> -> vector<16x128xf32>
    %298 = arith.addf %292, %297 : vector<16x128xf32>
    %cst_294 = arith.constant 0.000000e+00 : f32
    %299 = vector.broadcast %cst_294 : f32 to vector<16x128xf32>
    %300 = arith.maximumf %298, %299 : vector<16x128xf32>
    %301 = arith.truncf %300 : vector<16x128xf32> to vector<16x128xbf16>
    %c3_295 = arith.constant 3 : index
    %c0_296 = arith.constant 0 : index
    %c0_297 = arith.constant 0 : index
    %302 = vector.load %arg7[%c3_295, %c0_296, %c0_297] : memref<4x128x128xbf16, #tpu.memory_space<vmem>>, vector<1x128x128xbf16>
    %303 = vector.shape_cast %302 : vector<1x128x128xbf16> to vector<128x128xbf16>
    %cst_298 = arith.constant dense<0.000000e+00> : vector<16x128xf32>
    %304 = tpu.matmul %301, %303, %cst_298 {dimension_numbers = #tpu.dot_dimension_numbers<[1], [0], [0], [1], [0, 0, 1, 1], [], []>} : vector<16x128xbf16>, vector<128x128xbf16>, vector<16x128xf32> -> vector<16x128xf32>
    %305 = arith.addf %278, %304 : vector<16x128xf32>
    %cst_299 = arith.constant 0.000000e+00 : f32
    %306 = vector.broadcast %cst_299 : f32 to vector<16x128xf32>
    %307 = arith.maximumf %305, %306 : vector<16x128xf32>
    %308 = arith.truncf %307 : vector<16x128xf32> to vector<16x128xbf16>
    %c0_300 = arith.constant 0 : index
    %c0_301 = arith.constant 0 : index
    %309 = vector.load %arg9[%c0_300, %c0_301] : memref<128x128xbf16, #tpu.memory_space<vmem>>, vector<128x128xbf16>
    %cst_302 = arith.constant dense<0.000000e+00> : vector<16x128xf32>
    %310 = tpu.matmul %308, %309, %cst_302 {dimension_numbers = #tpu.dot_dimension_numbers<[1], [0], [0], [1], [0, 0, 1, 1], [], []>} : vector<16x128xbf16>, vector<128x128xbf16>, vector<16x128xf32> -> vector<16x128xf32>
    %c0_303 = arith.constant 0 : index
    %c0_304 = arith.constant 0 : index
    %311 = vector.load %arg2[%c0_303, %c0_304] : memref<16x16xbf16, #tpu.memory_space<vmem>>, vector<16x16xbf16>
    %c0_305 = arith.constant 0 : index
    %c0_306 = arith.constant 0 : index
    %312 = vector.load %arg10[%c0_305, %c0_306] : memref<16x128xbf16, #tpu.memory_space<vmem>>, vector<16x128xbf16>
    %cst_307 = arith.constant dense<0.000000e+00> : vector<16x128xf32>
    %313 = tpu.matmul %311, %312, %cst_307 {dimension_numbers = #tpu.dot_dimension_numbers<[1], [0], [0], [1], [0, 0, 1, 1], [], []>} : vector<16x16xbf16>, vector<16x128xbf16>, vector<16x128xf32> -> vector<16x128xf32>
    %314 = arith.addf %310, %313 : vector<16x128xf32>
    %c0_308 = arith.constant 0 : index
    %c0_309 = arith.constant 0 : index
    %315 = vector.load %arg11[%c0_308, %c0_309] : memref<1x128xf32, #tpu.memory_space<vmem>>, vector<1x128xf32>
    %316 = vector.broadcast %315 : vector<1x128xf32> to vector<16x128xf32>
    %317 = arith.addf %314, %316 : vector<16x128xf32>
    %cst_310 = arith.constant 0.000000e+00 : f32
    %318 = vector.broadcast %cst_310 : f32 to vector<16x128xf32>
    %319 = arith.maximumf %317, %318 : vector<16x128xf32>
    %c0_311 = arith.constant 0 : index
    %c0_312 = arith.constant 0 : index
    %320 = vector.load %arg12[%c0_311, %c0_312] : memref<1x128xf32, #tpu.memory_space<vmem>>, vector<1x128xf32>
    %321 = vector.broadcast %320 : vector<1x128xf32> to vector<16x128xf32>
    %322 = arith.mulf %319, %321 : vector<16x128xf32>
    %cst_313 = arith.constant dense<0.000000e+00> : vector<16xf32>
    %323 = vector.multi_reduction <add>, %322, %cst_313 [1] : vector<16x128xf32> to vector<16xf32>
    %324 = vector.shape_cast %323 : vector<16xf32> to vector<16x1xf32>
    %c0_314 = arith.constant 0 : index
    %325 = memref.load %arg13[%c0_314] : memref<1xf32, #tpu.memory_space<smem>>
    %326 = vector.broadcast %325 : f32 to vector<16x1xf32>
    %327 = arith.addf %324, %326 : vector<16x1xf32>
    %c0_315 = arith.constant 0 : index
    %c0_316 = arith.constant 0 : index
    %328 = vector.load %arg14[%c0_315, %c0_316] : memref<16x1xf32, #tpu.memory_space<vmem>>, vector<16x1xf32>
    tpu.vector_store %arg14[%c0_315, %c0_316], %327 {strides = array<i32>} : memref<16x1xf32, #tpu.memory_space<vmem>>, vector<16x1xf32>,
    return
  }
  func.func @transform_0(%arg0: i32) -> (i32, i32, i32) {
    %c0_i32 = arith.constant 0 : i32
    %c0_i32_0 = arith.constant 0 : i32
    %c0_i32_1 = arith.constant 0 : i32
    return %c0_i32, %arg0, %c0_i32_0 : i32, i32, i32
  }
  func.func @transform_1(%arg0: i32) -> (i32, i32) {
    %c0_i32 = arith.constant 0 : i32
    %c0_i32_0 = arith.constant 0 : i32
    return %arg0, %c0_i32 : i32, i32
  }
  func.func @transform_2(%arg0: i32) -> (i32, i32, i32) {
    %c0_i32 = arith.constant 0 : i32
    %c0_i32_0 = arith.constant 0 : i32
    %c0_i32_1 = arith.constant 0 : i32
    %c0_i32_2 = arith.constant 0 : i32
    return %c0_i32, %c0_i32_0, %c0_i32_1 : i32, i32, i32
  }
  func.func @transform_3(%arg0: i32) -> (i32, i32) {
    %c0_i32 = arith.constant 0 : i32
    %c0_i32_0 = arith.constant 0 : i32
    %c0_i32_1 = arith.constant 0 : i32
    return %c0_i32, %c0_i32_0 : i32, i32
  }
  func.func @transform_4(%arg0: i32) -> (i32, i32, i32) {
    %c0_i32 = arith.constant 0 : i32
    %c0_i32_0 = arith.constant 0 : i32
    %c0_i32_1 = arith.constant 0 : i32
    %c0_i32_2 = arith.constant 0 : i32
    return %c0_i32, %c0_i32_0, %c0_i32_1 : i32, i32, i32
  }
  func.func @transform_5(%arg0: i32) -> (i32, i32) {
    %c0_i32 = arith.constant 0 : i32
    %c0_i32_0 = arith.constant 0 : i32
    %c0_i32_1 = arith.constant 0 : i32
    return %c0_i32, %c0_i32_0 : i32, i32
  }
  func.func @transform_6(%arg0: i32) -> (i32, i32, i32) {
    %c0_i32 = arith.constant 0 : i32
    %c0_i32_0 = arith.constant 0 : i32
    %c0_i32_1 = arith.constant 0 : i32
    %c0_i32_2 = arith.constant 0 : i32
    return %c0_i32, %c0_i32_0, %c0_i32_1 : i32, i32, i32
  }
  func.func @transform_7(%arg0: i32) -> (i32, i32) {
    %c0_i32 = arith.constant 0 : i32
    %c0_i32_0 = arith.constant 0 : i32
    %c0_i32_1 = arith.constant 0 : i32
    return %c0_i32, %c0_i32_0 : i32, i32
  }
  func.func @transform_8(%arg0: i32) -> (i32, i32) {
    %c0_i32 = arith.constant 0 : i32
    %c0_i32_0 = arith.constant 0 : i32
    %c0_i32_1 = arith.constant 0 : i32
    return %c0_i32, %c0_i32_0 : i32, i32
  }
  func.func @transform_9(%arg0: i32) -> (i32, i32) {
    %c0_i32 = arith.constant 0 : i32
    %c0_i32_0 = arith.constant 0 : i32
    %c0_i32_1 = arith.constant 0 : i32
    return %c0_i32, %c0_i32_0 : i32, i32
  }
  func.func @transform_10(%arg0: i32) -> (i32, i32) {
    %c0_i32 = arith.constant 0 : i32
    %c0_i32_0 = arith.constant 0 : i32
    %c0_i32_1 = arith.constant 0 : i32
    return %c0_i32, %c0_i32_0 : i32, i32
  }
  func.func @transform_11(%arg0: i32) -> (i32, i32) {
    %c0_i32 = arith.constant 0 : i32
    %c0_i32_0 = arith.constant 0 : i32
    %c0_i32_1 = arith.constant 0 : i32
    return %c0_i32, %c0_i32_0 : i32, i32
  }
  func.func @transform_12(%arg0: i32) -> i32 {
    %c0_i32 = arith.constant 0 : i32
    %c0_i32_0 = arith.constant 0 : i32
    return %c0_i32 : i32
  }
  func.func @transform_13(%arg0: i32) -> (i32, i32) {
    %c0_i32 = arith.constant 0 : i32
    %c0_i32_0 = arith.constant 0 : i32
    return %arg0, %c0_i32 : i32, i32
  }
}

</mosaic_0001>

<bundles_post_ra>
// kernel: sac_critic_forward.1
= control target key start
LH: loop header
LB: loop body
LE: loop exit
PB: predicated region body
PF: predicated region fallthrough
CT: control target
= control target key end

     0   :  { %19 = vsyncpa [#allocation5], 0  ;;  %s4436_s25 = smov [#allocation4]   ;;  %s5343_s0 = inlined_call_operand.vmem [shape: bf16[16,16,32], index: 0, kind: input, shape index: {}]   ;;  %s5344_s1 = inlined_call_operand.vmem [shape: bf16[16,16], index: 1, kind: input, shape index: {}]   ;;  %s5345_s2 = inlined_call_operand.vmem [shape: bf16[3,32,128], index: 2, kind: input, shape index: {}]   ;;  %s5346_s3 = inlined_call_operand.vmem [shape: f32[1,128], index: 3, kind: input, shape index: {}]   ;;  %s5347_s4 = inlined_call_operand.hbm [shape: bf16[3,128,128], index: 4, kind: input, shape index: {}]   ;;  %s5348_s5 = inlined_call_operand.vmem [shape: f32[1,128], index: 5, kind: input, shape index: {}]   ;;  %s5349_s6 = inlined_call_operand.vmem [shape: bf16[4,128,128], index: 6, kind: input, shape index: {}]   ;;  %s5350_s7 = inlined_call_operand.vmem [shape: f32[1,128], index: 7, kind: input, shape index: {}]   ;;  %s5351_s8 = inlined_call_operand.vmem [shape: bf16[128,128], index: 8, kind: input, shape index: {}]   ;;  %s5352_s9 = inlined_call_operand.vmem [shape: bf16[16,128], index: 9, kind: input, shape index: {}]   ;;  %s5353_s10 = inlined_call_operand.vmem [shape: f32[1,128], index: 10, kind: input, shape index: {}]   ;;  %s5354_s11 = inlined_call_operand.vmem [shape: f32[1,128], index: 11, kind: input, shape index: {}]   ;;  %s5355_s12 = inlined_call_operand.<no memory space> [shape: f32[1], index: 12, kind: input, shape index: {}]   ;;  %s5356_s13 = inlined_call_operand.vmem [shape: f32[16,1], index: 13, kind: output, shape index: {}]  }
   0x1   :  { %s33_s26 = sshll.u32 %s4436_s25, 4  ;;  %s4412_s29 = scalar_lea.hbm %s5347_s4, 3072  ;;  %s34_s26 = int_to_ptr.vmem [resolvable:$true] %s33_s26 }
   0x2   :  { %p4413_p0 = scmp.ne.s32.totalorder %s5347_s4, %s4412_s29  ;;  %p4416_p1 = scmp.lt.u32.totalorder %s4412_s29, %s5347_s4 }
   0x4   :  { %p4418_p2 = pnand %p4416_p1, %p4413_p0 }
   0x6   :  { %4421 = shalt.err (!%p4418_p2)
}
   0x7   :  { %s4422_s17 = scalar_lea.vmem %s34_s26, 3072  ;;  %p4427_p4 = scmp.lt.s32.totalorder %s34_s26, %s34_s26 }
   0x8   :  { %p4423_p3 = scmp.ne.s32.totalorder %s34_s26, %s4422_s17  ;;  %p4428_p5 = scmp.lt.s32.totalorder %s4422_s17, %s4422_s17 }
   0xa   :  { %p4429_p6 = por %p4428_p5, %p4427_p4 }
   0xc   :  { %p4430_p7 = pnand %p4429_p6, %p4423_p3 }
   0xe   :  { %4433 = shalt.err (!%p4430_p7)
}
   0xf   :  { %s4437_s18 = smov 64   ;;  %s4438_s19 = smov 4  }
  0x10   :  { %39 = dma.hbm_to_vmem [thread:$0]  %s5347_s4, 3072, %s34_s26, [#allocation5], %s4437_s18, %s4437_s18, %s4438_s19  }
  0x11   :  { %4434 = dma.done.wait [#allocation5], 3072  }
  0x12   :  { %4435 = vsyncadd [#allocation5], 4294964224  ;;  %v4439_v0 = vmov 0.0   ;;  %vm4440_vm0 = vmmov 0   ;;  %v4277_v1 = vld [vmem:[%s5345_s2 + $0x10] sm:$0xff]   ;;  %v4278_v2 = vld [vmem:[%s5345_s2 + $0x18] sm:$0xff]  }
  0x13   :  { %3638 = vmatprep.subr.bf16.mxu0 %v4439_v0  ;;  %3642 = vmatprep.mubr.msk.bf16.mxu0 %vm4440_vm0, %v4439_v0  ;;  %v4279_v3 = vld [vmem:[%s5343_s0] sm:$0xff]   ;;  %v4282_v4 = vld [vmem:[%s5345_s2 + $0x10] sm:$0xff]   ;;  %vm85_vm1 = vcmask 261120   ;;  %v4284_v6 = vld [vmem:[%s5345_s2 + $0x18] sm:$0xff]   ;;  %vm2926_vm2 = vcmask 130048   ;;  %vm3088_vm3 = vcmask 7168  }
  0x14   :  { %3662 = vmatprep.subr.bf16.mxu1 %v4439_v0  ;;  %3666 = vmatprep.mubr.msk.bf16.mxu1 %vm4440_vm0, %v4439_v0  ;;  %v4280_v5 = vld [vmem:[%s5345_s2 + $0x20] sm:$0xff]   ;;  %v4281_v7 = vld [vmem:[%s5345_s2 + $0x28] sm:$0xff]   ;;  %v4285_v8 = vld [vmem:[%s5343_s0 + $0x10] sm:$0xff]  }
  0x15   :  { %3639 = vmatpush3.bf16.msra.mxu0 %v4277_v1  ;;  %3663 = vmatpush3.bf16.msra.mxu1 %v4282_v4  ;;  %v4287_v9 = vld [vmem:[%s5345_s2 + $0x20] sm:$0xff]   ;;  %v4289_v10 = vld [vmem:[%s5345_s2 + $0x28] sm:$0xff]   ;;  %v4291_v14 = vld [vmem:[%s5343_s0 + $0x18] sm:$0xff]  }
  0x16   :  { %3640 = vmatprep.subr.bf16.mxu0 %v4439_v0  ;;  %3664 = vmatprep.subr.bf16.mxu1 %v4439_v0  ;;  %v4283_v11 = vld [vmem:[%s5343_s0 + $0x8] sm:$0xff]   ;;  %v4286_v12 = vld [vmem:[%s5345_s2] sm:$0xff]   ;;  %v4299_v21 = vld [vmem:[%s5345_s2 + $0x10] sm:$0xff]  }
  0x17   :  { %v4288_v13 = vld [vmem:[%s5345_s2 + $0x8] sm:$0xff]   ;;  %v4293_v15 = vld [vmem:[%s5345_s2] sm:$0xff]   ;;  %v4296_v22 = vld [vmem:[%s5343_s0 + $0x18] sm:$0xff]  }
  0x18   :  { %v4290_v16 = vld [vmem:[%s5343_s0 + $0x8] sm:$0xff]   ;;  %v4292_v17 = vld [vmem:[%s5345_s2] sm:$0xff]   ;;  %v4298_v23 = vld [vmem:[%s5345_s2 + $0x10] sm:$0xff]  }
  0x19   :  { %3641 = vmatpush3.bf16.msra.mxu0 %v4278_v2  ;;  %3665 = vmatpush3.bf16.msra.mxu1 %v4284_v6  ;;  %v4295_v18 = vld [vmem:[%s5345_s2 + $0x8] sm:$0xff]   ;;  %v4301_v24 = vld [vmem:[%s5345_s2 + $0x18] sm:$0xff]   ;;  %v4303_v26 = vld [vmem:[%s5343_s0 + $0x30] sm:$0xff]  }
  0x1a   :  { %3646 = vmatprep.subr.bf16.mxu0 %v4439_v0  ;;  %3670 = vmatprep.subr.bf16.mxu1 %v4439_v0  ;;  %v4294_v19 = vld [vmem:[%s5345_s2 + $0x8] sm:$0xff]   ;;  %v4300_v25 = vld [vmem:[%s5345_s2 + $0x18] sm:$0xff]   ;;  %v4305_v27 = vld [vmem:[%s5345_s2 + $0x20] sm:$0xff]  }
  0x1b   :  { %v4297_v20 = vld [vmem:[%s5343_s0 + $0x28] sm:$0xff]   ;;  %v4302_v28 = vld [vmem:[%s5343_s0 + $0x20] sm:$0xff]   ;;  %v4309_v32 = vld [vmem:[%s5343_s0 + $0x38] sm:$0xff]  }
  0x1c   :  { %3643 = vmatmul.mubr.msk.bf16.vlgmr.msra.gmra.mrb[0].mxu0 %vm85_vm1, %v4279_v3  ;;  %3667 = vmatmul.mubr.msk.bf16.vlgmr.msra.gmra.mrb[0].mxu1 %vm85_vm1, %v4285_v8  ;;  %v4304_v29 = vld [vmem:[%s5345_s2 + $0x20] sm:$0xff]   ;;  %v4307_v30 = vld [vmem:[%s5345_s2 + $0x28] sm:$0xff]   ;;  %v4322_v39 = vld [vmem:[%s5345_s2 + $0x10] sm:$0xff]  }
  0x1d   :  { %3647 = vmatpush3.bf16.msra.mxu0 %v4280_v5  ;;  %3650 = vmatprep.mubr.msk.bf16.mxu0 %vm4440_vm0, %v4439_v0  ;;  %v4306_v31 = vld [vmem:[%s5345_s2 + $0x28] sm:$0xff]   ;;  %v4319_v33 = vld [vmem:[%s5345_s2] sm:$0xff]   ;;  %v4312_v40 = vld [vmem:[%s5343_s0 + $0x38] sm:$0xff]  }
  0x1e   :  { %3648 = vmatprep.subr.bf16.mxu0 %v4439_v0  ;;  %3671 = vmatpush3.bf16.msra.mxu1 %v4287_v9  ;;  %v4308_v34 = vld [vmem:[%s5343_s0 + $0x28] sm:$0xff]   ;;  %v4310_v35 = vld [vmem:[%s5345_s2] sm:$0xff]   ;;  %v4313_v41 = vld [vmem:[%s5345_s2 + $0x10] sm:$0xff]  }
  0x1f   :  { %3672 = vmatprep.subr.bf16.mxu1 %v4439_v0  ;;  %3674 = vmatprep.mubr.msk.bf16.mxu1 %vm4440_vm0, %v4439_v0  ;;  %v4320_v36 = vld [vmem:[%s5345_s2 + $0x8] sm:$0xff]   ;;  %v4323_v42 = vld [vmem:[%s5345_s2 + $0x18] sm:$0xff]   ;;  %v4324_v44 = vld [vmem:[%s5343_s0 + $0x50] sm:$0xff]  }
  0x20   :  { %v4311_v37 = vld [vmem:[%s5345_s2 + $0x8] sm:$0xff]   ;;  %v4314_v43 = vld [vmem:[%s5345_s2 + $0x18] sm:$0xff]   ;;  %v4325_v45 = vld [vmem:[%s5345_s2 + $0x20] sm:$0xff]  }
  0x21   :  { %3649 = vmatpush3.bf16.msra.mxu0 %v4281_v7  ;;  %v4321_v38 = vld [vmem:[%s5343_s0 + $0x48] sm:$0xff]   ;;  %v4315_v46 = vld [vmem:[%s5343_s0 + $0x40] sm:$0xff]   ;;  %v4327_v50 = vld [vmem:[%s5343_s0 + $0x58] sm:$0xff]  }
  0x22   :  { %3654 = vmatprep.subr.bf16.mxu0 %v4439_v0  ;;  %3673 = vmatpush3.bf16.msra.mxu1 %v4289_v10  ;;  %v4316_v47 = vld [vmem:[%s5345_s2 + $0x20] sm:$0xff]   ;;  %v4326_v48 = vld [vmem:[%s5345_s2 + $0x28] sm:$0xff]   ;;  %v4344_v57 = vld [vmem:[%s5345_s2 + $0x10] sm:$0xff]  }
  0x23   :  { %3702 = vmatprep.subr.bf16.mxu1 %v4439_v0  ;;  %v4317_v49 = vld [vmem:[%s5345_s2 + $0x28] sm:$0xff]   ;;  %v4338_v51 = vld [vmem:[%s5345_s2] sm:$0xff]   ;;  %v4330_v58 = vld [vmem:[%s5343_s0 + $0x58] sm:$0xff]  }
  0x24   :  { %v4318_v52 = vld [vmem:[%s5343_s0 + $0x48] sm:$0xff]   ;;  %v4328_v53 = vld [vmem:[%s5345_s2] sm:$0xff]   ;;  %v4331_v59 = vld [vmem:[%s5345_s2 + $0x10] sm:$0xff]  }
  0x25   :  { %v4340_v54 = vld [vmem:[%s5345_s2 + $0x8] sm:$0xff]   ;;  %v4346_v60 = vld [vmem:[%s5345_s2 + $0x18] sm:$0xff]   ;;  %v4348_v62 = vld [vmem:[%s5343_s0 + $0x70] sm:$0xff]  }
  0x26   :  { %v4329_v55 = vld [vmem:[%s5345_s2 + $0x8] sm:$0xff]   ;;  %v4332_v61 = vld [vmem:[%s5345_s2 + $0x18] sm:$0xff]   ;;  %v4333_v63 = vld [vmem:[%s5343_s0 + $0x60] sm:$0xff]  }
  0x27   :  { %v4342_v56 = vld [vmem:[%s5343_s0 + $0x68] sm:$0xff]   ;;  %v4350_v1 = vld [vmem:[%s5345_s2 + $0x20] sm:$0xff]   ;;  %v4354_v5 = vld [vmem:[%s5343_s0 + $0x78] sm:$0xff]  }
  0x28   :  { %3651 = vmatmul.mubr.msk.bf16.vlgmr.msra.gmra.mrb[0].mxu0 %vm85_vm1, %v4283_v11  ;;  %3675 = vmatmul.mubr.msk.bf16.vlgmr.msra.gmra.mrb[0].mxu1 %vm85_vm1, %v4291_v14  ;;  %v4334_v2 = vld [vmem:[%s5345_s2 + $0x20] sm:$0xff]   ;;  %v4352_v3 = vld [vmem:[%s5345_s2 + $0x28] sm:$0xff]   ;;  %v4858_v9 = vld [vmem:[#allocation4 + $0x50] sm:$0xff]  }
  0x29   :  { %3655 = vmatpush3.bf16.msra.mxu0 %v4286_v12  ;;  %3658 = vmatprep.mubr.msk.bf16.mxu0 %vm4440_vm0, %v4439_v0  ;;  %v4335_v4 = vld [vmem:[%s5345_s2 + $0x28] sm:$0xff]   ;;  %v4845_v7 = vld [vmem:[#allocation4 + $0x40] sm:$0xff]   ;;  %v4862_v10 = vld [vmem:[#allocation4 + $0x58] sm:$0xff]  }
  0x2a   :  { %3656 = vmatprep.subr.bf16.mxu0 %v4439_v0  ;;  %3703 = vmatpush3.bf16.msra.mxu1 %v4293_v15  ;;  %v4336_v6 = vld [vmem:[%s5343_s0 + $0x68] sm:$0xff]   ;;  %v4866_v11 = vld [vmem:[#allocation4 + $0x60] sm:$0xff]   ;;  %v4878_v14 = vld [vmem:[#allocation4 + $0x78] sm:$0xff]  }
  0x2b   :  { %3704 = vmatprep.subr.bf16.mxu1 %v4439_v0  ;;  %3706 = vmatprep.mubr.msk.bf16.mxu1 %vm4440_vm0, %v4439_v0  ;;  %v4852_v8 = vld [vmem:[#allocation4 + $0x48] sm:$0xff]   ;;  %v4886_v15 = vld [vmem:[%s5346_s3] ss:$0 sm:$0xff] }
  0x2c   :  { %v4870_v12 = vld [vmem:[#allocation4 + $0x68] sm:$0xff]  }
  0x2d   :  { %3657 = vmatpush3.bf16.msra.mxu0 %v4288_v13  ;;  %v4874_v13 = vld [vmem:[#allocation4 + $0x70] sm:$0xff]  }
  0x2e   :  { %3678 = vmatprep.subr.bf16.mxu0 %v4439_v0  ;;  %3705 = vmatpush3.bf16.msra.mxu1 %v4295_v18 }
  0x2f   :  { %3710 = vmatprep.subr.bf16.mxu1 %v4439_v0 }
  0x30   :  { %3659 = vmatmul.mubr.msk.bf16.vlgmr.msra.gmra.mrb[4].mxu0 %vm85_vm1, %v4290_v16 }
  0x31   :  { %3679 = vmatpush3.bf16.msra.mxu0 %v4292_v17  ;;  %3682 = vmatprep.mubr.msk.bf16.mxu0 %vm4440_vm0, %v4439_v0 }
  0x32   :  { %3680 = vmatprep.subr.bf16.mxu0 %v4439_v0  ;;  %3707 = vmatmul.mubr.msk.bf16.vlgmr.msra.gmra.mrb[4].mxu1 %vm85_vm1, %v4297_v20 }
  0x33   :  { %3711 = vmatpush3.bf16.msra.mxu1 %v4299_v21  ;;  %3714 = vmatprep.mubr.msk.bf16.mxu1 %vm4440_vm0, %v4439_v0 }
  0x34   :  { %3712 = vmatprep.subr.bf16.mxu1 %v4439_v0 }
  0x35   :  { %3681 = vmatpush3.bf16.msra.mxu0 %v4294_v19 }
  0x36   :  { %3686 = vmatprep.subr.bf16.mxu0 %v4439_v0 }
  0x37   :  { %3713 = vmatpush3.bf16.msra.mxu1 %v4301_v24 }
  0x38   :  { %3683 = vmatmul.mubr.msk.bf16.vlgmr.msra.gmra.mrb[8].mxu0 %vm85_vm1, %v4296_v22  ;;  %3718 = vmatprep.subr.bf16.mxu1 %v4439_v0 }
  0x39   :  { %3687 = vmatpush3.bf16.msra.mxu0 %v4298_v23  ;;  %3690 = vmatprep.mubr.msk.bf16.mxu0 %vm4440_vm0, %v4439_v0 }
  0x3a   :  { %3688 = vmatprep.subr.bf16.mxu0 %v4439_v0 }
  0x3d   :  { %3689 = vmatpush3.bf16.msra.mxu0 %v4300_v25  ;;  %v4890_v25 = vld [vmem:[#allocation4 + $0x80] sm:$0xff]  }
  0x3e   :  { %3694 = vmatprep.subr.bf16.mxu0 %v4439_v0  ;;  %3715 = vmatmul.mubr.msk.bf16.vlgmr.msra.gmra.mrb[4].mxu1 %vm85_vm1, %v4303_v26 }
  0x3f   :  { %3719 = vmatpush3.bf16.msra.mxu1 %v4305_v27  ;;  %3722 = vmatprep.mubr.msk.bf16.mxu1 %vm4440_vm0, %v4439_v0 }
  0x40   :  { %3720 = vmatprep.subr.bf16.mxu1 %v4439_v0 }
  0x43   :  { %3721 = vmatpush3.bf16.msra.mxu1 %v4307_v30 }
  0x44   :  { %3691 = vmatmul.mubr.msk.bf16.vlgmr.msra.gmra.mrb[8].mxu0 %vm85_vm1, %v4302_v28  ;;  %3750 = vmatprep.subr.bf16.mxu1 %v4439_v0 }
  0x45   :  { %3695 = vmatpush3.bf16.msra.mxu0 %v4304_v29  ;;  %3698 = vmatprep.mubr.msk.bf16.mxu0 %vm4440_vm0, %v4439_v0 }
  0x46   :  { %3696 = vmatprep.subr.bf16.mxu0 %v4439_v0 }
  0x49   :  { %3697 = vmatpush3.bf16.msra.mxu0 %v4306_v31 }
  0x4a   :  { %3726 = vmatprep.subr.bf16.mxu0 %v4439_v0  ;;  %3723 = vmatmul.mubr.msk.bf16.vlgmr.msra.gmra.mrb[4].mxu1 %vm85_vm1, %v4309_v32 }
  0x4b   :  { %3751 = vmatpush3.bf16.msra.mxu1 %v4319_v33  ;;  %3754 = vmatprep.mubr.msk.bf16.mxu1 %vm4440_vm0, %v4439_v0  ;;  %v4894_v33 = vld [vmem:[#allocation4 + $0x88] sm:$0xff]  }
  0x4c   :  { %3752 = vmatprep.subr.bf16.mxu1 %v4439_v0 }
  0x4f   :  { %3753 = vmatpush3.bf16.msra.mxu1 %v4320_v36 }
  0x50   :  { %3699 = vmatmul.mubr.msk.bf16.vlgmr.msra.gmra.mrb[8].mxu0 %vm85_vm1, %v4308_v34  ;;  %3758 = vmatprep.subr.bf16.mxu1 %v4439_v0 }
  0x51   :  { %3727 = vmatpush3.bf16.msra.mxu0 %v4310_v35  ;;  %3730 = vmatprep.mubr.msk.bf16.mxu0 %vm4440_vm0, %v4439_v0 }
  0x52   :  { %3728 = vmatprep.subr.bf16.mxu0 %v4439_v0  ;;  %3755 = vmatmul.mubr.msk.bf16.vlgmr.msra.gmra.mrb[8].mxu1 %vm85_vm1, %v4321_v38 }
  0x53   :  { %3759 = vmatpush3.bf16.msra.mxu1 %v4322_v39  ;;  %3762 = vmatprep.mubr.msk.bf16.mxu1 %vm4440_vm0, %v4439_v0 }
  0x54   :  { %3760 = vmatprep.subr.bf16.mxu1 %v4439_v0 }
  0x55   :  { %3729 = vmatpush3.bf16.msra.mxu0 %v4311_v37 }
  0x56   :  { %3734 = vmatprep.subr.bf16.mxu0 %v4439_v0 }
  0x57   :  { %3761 = vmatpush3.bf16.msra.mxu1 %v4323_v42 }
  0x58   :  { %3731 = vmatmul.mubr.msk.bf16.vlgmr.msra.gmra.mrb[12].mxu0 %vm85_vm1, %v4312_v40  ;;  %3766 = vmatprep.subr.bf16.mxu1 %v4439_v0  ;;  %v4901_v40 = vld [vmem:[#allocation4 + $0x90] sm:$0xff]  }
  0x59   :  { %3735 = vmatpush3.bf16.msra.mxu0 %v4313_v41  ;;  %3738 = vmatprep.mubr.msk.bf16.mxu0 %vm4440_vm0, %v4439_v0 }
  0x5a   :  { %3736 = vmatprep.subr.bf16.mxu0 %v4439_v0 }
  0x5d   :  { %3737 = vmatpush3.bf16.msra.mxu0 %v4314_v43  ;;  %v4907_v43 = vld [vmem:[#allocation4 + $0x98] sm:$0xff]  }
  0x5e   :  { %3742 = vmatprep.subr.bf16.mxu0 %v4439_v0  ;;  %3763 = vmatmul.mubr.msk.bf16.vlgmr.msra.gmra.mrb[8].mxu1 %vm85_vm1, %v4324_v44  ;;  %v4911_v44 = vld [vmem:[#allocation4 + $0xa0] sm:$0xff]  }
  0x5f   :  { %3767 = vmatpush3.bf16.msra.mxu1 %v4325_v45  ;;  %3770 = vmatprep.mubr.msk.bf16.mxu1 %vm4440_vm0, %v4439_v0  ;;  %v4915_v45 = vld [vmem:[#allocation4 + $0xa8] sm:$0xff]  }
  0x60   :  { %3768 = vmatprep.subr.bf16.mxu1 %v4439_v0 }
  0x63   :  { %3769 = vmatpush3.bf16.msra.mxu1 %v4326_v48 }
  0x64   :  { %3739 = vmatmul.mubr.msk.bf16.vlgmr.msra.gmra.mrb[12].mxu0 %vm85_vm1, %v4315_v46  ;;  %3798 = vmatprep.subr.bf16.mxu1 %v4439_v0  ;;  %v4919_v46 = vld [vmem:[#allocation4 + $0xb0] sm:$0xff]  }
  0x65   :  { %3743 = vmatpush3.bf16.msra.mxu0 %v4316_v47  ;;  %3746 = vmatprep.mubr.msk.bf16.mxu0 %vm4440_vm0, %v4439_v0  ;;  %v4923_v47 = vld [vmem:[#allocation4 + $0xb8] sm:$0xff]  }
  0x66   :  { %3744 = vmatprep.subr.bf16.mxu0 %v4439_v0 }
  0x69   :  { %3745 = vmatpush3.bf16.msra.mxu0 %v4317_v49  ;;  %v4927_v49 = vld [vmem:[#allocation4] sm:$0xff]  }
  0x6a   :  { %3774 = vmatprep.subr.bf16.mxu0 %v4439_v0  ;;  %3771 = vmatmul.mubr.msk.bf16.vlgmr.msra.gmra.mrb[8].mxu1 %vm85_vm1, %v4327_v50 }
  0x6b   :  { %3799 = vmatpush3.bf16.msra.mxu1 %v4338_v51  ;;  %3802 = vmatprep.mubr.msk.bf16.mxu1 %vm4440_vm0, %v4439_v0 }
  0x6c   :  { %3800 = vmatprep.subr.bf16.mxu1 %v4439_v0 }
  0x6f   :  { %3801 = vmatpush3.bf16.msra.mxu1 %v4340_v54 }
  0x70   :  { %3747 = vmatmul.mubr.msk.bf16.vlgmr.msra.gmra.mrb[12].mxu0 %vm85_vm1, %v4318_v52  ;;  %3806 = vmatprep.subr.bf16.mxu1 %v4439_v0 }
  0x71   :  { %3775 = vmatpush3.bf16.msra.mxu0 %v4328_v53  ;;  %3778 = vmatprep.mubr.msk.bf16.mxu0 %vm4440_vm0, %v4439_v0 }
  0x72   :  { %3776 = vmatprep.subr.bf16.mxu0 %v4439_v0  ;;  %3803 = vmatmul.mubr.msk.bf16.vlgmr.msra.gmra.mrb[12].mxu1 %vm85_vm1, %v4342_v56 }
  0x73   :  { %3807 = vmatpush3.bf16.msra.mxu1 %v4344_v57  ;;  %3810 = vmatprep.mubr.msk.bf16.mxu1 %vm4440_vm0, %v4439_v0 }
  0x74   :  { %3808 = vmatprep.subr.bf16.mxu1 %v4439_v0 }
  0x75   :  { %3777 = vmatpush3.bf16.msra.mxu0 %v4329_v55 }
  0x76   :  { %3782 = vmatprep.subr.bf16.mxu0 %v4439_v0 }
  0x77   :  { %3809 = vmatpush3.bf16.msra.mxu1 %v4346_v60 }
  0x78   :  { %3779 = vmatmul.mubr.msk.bf16.vlgmr.msra.gmra.mrb[16].mxu0 %vm85_vm1, %v4330_v58  ;;  %3814 = vmatprep.subr.bf16.mxu1 %v4439_v0 }
  0x79   :  { %3783 = vmatpush3.bf16.msra.mxu0 %v4331_v59  ;;  %3786 = vmatprep.mubr.msk.bf16.mxu0 %vm4440_vm0, %v4439_v0  ;;  %v4935_v59 = vld [vmem:[#allocation4 + $0x8] sm:$0xff]  }
  0x7a   :  { %3784 = vmatprep.subr.bf16.mxu0 %v4439_v0 }
  0x7d   :  { %3785 = vmatpush3.bf16.msra.mxu0 %v4332_v61 }
  0x7e   :  { %3790 = vmatprep.subr.bf16.mxu0 %v4439_v0  ;;  %3811 = vmatmul.mubr.msk.bf16.vlgmr.msra.gmra.mrb[12].mxu1 %vm85_vm1, %v4348_v62 }
  0x7f   :  { %3815 = vmatpush3.bf16.msra.mxu1 %v4350_v1  ;;  %3818 = vmatprep.mubr.msk.bf16.mxu1 %vm4440_vm0, %v4439_v0 }
  0x80   :  { %3816 = vmatprep.subr.bf16.mxu1 %v4439_v0 }
  0x83   :  { %3817 = vmatpush3.bf16.msra.mxu1 %v4352_v3 }
  0x84   :  { %3787 = vmatmul.mubr.msk.bf16.vlgmr.msra.gmra.mrb[16].mxu0 %vm85_vm1, %v4333_v63  ;;  %3862 = vmatprep.subr.bf16.mxu1 %v4439_v0 }
  0x85   :  { %3791 = vmatpush3.bf16.msra.mxu0 %v4334_v2  ;;  %3794 = vmatprep.mubr.msk.bf16.mxu0 %vm4440_vm0, %v4439_v0 }
  0x86   :  { %3792 = vmatprep.subr.bf16.mxu0 %v4439_v0 }
  0x89   :  { %3793 = vmatpush3.bf16.msra.mxu0 %v4335_v4  ;;  %v4944_v4 = vld [vmem:[#allocation4 + $0x10] sm:$0xff]  }
  0x8a   :  { %3822 = vmatprep.subr.bf16.mxu0 %v4439_v0  ;;  %3819 = vmatmul.mubr.msk.bf16.vlgmr.msra.gmra.mrb[12].mxu1 %vm85_vm1, %v4354_v5 }
  0x8b   :  { %3878 = vmatprep.mubr.msk.bf16.mxu1 %vm4440_vm0, %v4439_v0 }
  0x90   :  { %3795 = vmatmul.mubr.msk.bf16.vlgmr.msra.gmra.mrb[16].mxu0 %vm85_vm1, %v4336_v6  ;;  %v4950_v6 = vld [vmem:[#allocation4 + $0x18] sm:$0xff]  }
  0x91   :  { %3823 = vmatpush3.bf16.msra.mxu0 %v4845_v7  ;;  %3838 = vmatprep.mubr.msk.bf16.mxu0 %vm4440_vm0, %v4439_v0 }
  0x92   :  { %3824 = vmatprep.subr.bf16.mxu0 %v4439_v0 }
  0x95   :  { %3825 = vmatpush3.bf16.msra.mxu0 %v4852_v8 }
  0x96   :  { %3826 = vmatprep.subr.bf16.mxu0 %v4439_v0 }
  0x99   :  { %3827 = vmatpush3.bf16.msra.mxu0 %v4858_v9 }
  0x9a   :  { %3828 = vmatprep.subr.bf16.mxu0 %v4439_v0 }
  0x9d   :  { %3829 = vmatpush3.bf16.msra.mxu0 %v4862_v10 }
  0x9e   :  { %3830 = vmatprep.subr.bf16.mxu0 %v4439_v0 }
  0xa1   :  { %3831 = vmatpush3.bf16.msra.mxu0 %v4866_v11 }
  0xa2   :  { %3832 = vmatprep.subr.bf16.mxu0 %v4439_v0 }
  0xa5   :  { %3833 = vmatpush3.bf16.msra.mxu0 %v4870_v12 }
  0xa6   :  { %3834 = vmatprep.subr.bf16.mxu0 %v4439_v0 }
  0xa9   :  { %3835 = vmatpush3.bf16.msra.mxu0 %v4874_v13 }
  0xaa   :  { %3836 = vmatprep.subr.bf16.mxu0 %v4439_v0 }
  0xad   :  { %3837 = vmatpush3.bf16.msra.mxu0 %v4878_v14 }
  0xae   :  { %3842 = vmatprep.subr.bf16.mxu0 %v4439_v0 }
  0xfb   :  { %v200_v16 = vpop.f32.mrb[0].mxu0  ;;  %v420_v24 = vpop.f32.mrb[0].mxu1 }
  0xfc   :  { %v4148_v17 = vadd.f32 %v4886_v15, %v200_v16  ;;  %v3652_v18 = vpop.f32.mrb[1].mxu0  ;;  %v3676_v26 = vpop.f32.mrb[1].mxu1  ;;  %v4954_v16 = vld [vmem:[#allocation4 + $0x20] sm:$0xff]  }
  0xfd   :  { %v203_v19 = vpop.f32.mrb[2].mxu0  ;;  %v423_v28 = vpop.f32.mrb[2].mxu1  ;;  %v4962_v18 = vld [vmem:[#allocation4 + $0x30] sm:$0xff]  }
  0xfe   :  { %v4149_v20 = vadd.f32 %v4886_v15, %v203_v19  ;;  %v3653_v21 = vpop.f32.mrb[3].mxu0  ;;  %v209_v22 = vmax.f32 %v4148_v17, 0.0  ;;  %v3677_v30 = vpop.f32.mrb[3].mxu1  ;;  %v4958_v17 = vld [vmem:[#allocation4 + $0x28] sm:$0xff]   ;;  %v4966_v19 = vld [vmem:[#allocation4 + $0x38] sm:$0xff]  }
 0x100   :  { %v210_v23 = vmax.f32 %v4149_v20, 0.0 }
 0x102   :  { %v211_v27 = vpack.c.bf16 %v210_v23, %v209_v22 }
 0x103   :  { %v274_v29 = vpop.f32.mrb[4].mxu0 }
 0x104   :  { %3839 = vmatmul.mubr.bf16.vlgmr.msra.gmra.mrb[20].mxu0 %v211_v27  ;;  %v287_v31 = vadd.f32 %v4886_v15, %v274_v29  ;;  %v3660_v32 = vpop.f32.mrb[5].mxu0 }
 0x105   :  { %3843 = vmatpush3.bf16.msra.mxu0 %v4890_v25  ;;  %v277_v34 = vpop.f32.mrb[6].mxu0  ;;  %3858 = vmatprep.mubr.msk.bf16.mxu0 %vm4440_vm0, %v4439_v0 }
 0x106   :  { %3844 = vmatprep.subr.bf16.mxu0 %v4439_v0  ;;  %v4151_v35 = vadd.f32 %v420_v24, %v287_v31  ;;  %v288_v36 = vadd.f32 %v4886_v15, %v277_v34  ;;  %v3661_v37 = vpop.f32.mrb[7].mxu0 }
 0x108   :  { %v429_v38 = vmax.f32 %v4151_v35, 0.0  ;;  %v4153_v39 = vadd.f32 %v423_v28, %v288_v36 }
 0x109   :  { %3845 = vmatpush3.bf16.msra.mxu0 %v4894_v33 }
 0x10a   :  { %3846 = vmatprep.subr.bf16.mxu0 %v4439_v0  ;;  %v430_v41 = vmax.f32 %v4153_v39, 0.0 }
 0x10c   :  { %v4904_v42 = vpack.c.bf16 %v430_v41, %v429_v38  ;;  %v4370_v41 = vld [vmem:[%s5349_s6] sm:$0xff]  }
 0x10d   :  { %3847 = vmatpush3.bf16.msra.mxu0 %v4901_v40  ;;  %3863 = vmatpush3.bf16.msra.mxu1 %v4370_v41 }
 0x10e   :  { %3848 = vmatprep.subr.bf16.mxu0 %v4439_v0  ;;  %3864 = vmatprep.subr.bf16.mxu1 %v4439_v0 }
 0x111   :  { %3849 = vmatpush3.bf16.msra.mxu0 %v4907_v43 }
 0x112   :  { %3850 = vmatprep.subr.bf16.mxu0 %v4439_v0 }
 0x115   :  { %3851 = vmatpush3.bf16.msra.mxu0 %v4911_v44 }
 0x116   :  { %3852 = vmatprep.subr.bf16.mxu0 %v4439_v0 }
 0x119   :  { %3853 = vmatpush3.bf16.msra.mxu0 %v4915_v45 }
 0x11a   :  { %3854 = vmatprep.subr.bf16.mxu0 %v4439_v0 }
 0x11d   :  { %3855 = vmatpush3.bf16.msra.mxu0 %v4919_v46  ;;  %v862_v48 = vpop.f32.mrb[4].mxu1 }
 0x11e   :  { %3856 = vmatprep.subr.bf16.mxu0 %v4439_v0  ;;  %v4156_v50 = vadd.f32 %v4886_v15, %v862_v48  ;;  %v3724_v51 = vpop.f32.mrb[5].mxu1 }
 0x11f   :  { %v865_v52 = vpop.f32.mrb[6].mxu1 }
 0x120   :  { %v871_v53 = vmax.f32 %v4156_v50, 0.0  ;;  %v4157_v54 = vadd.f32 %v4886_v15, %v865_v52  ;;  %v3725_v56 = vpop.f32.mrb[7].mxu1  ;;  %v4371_v52 = vld [vmem:[%s5349_s6 + $0x8] sm:$0xff]  }
 0x121   :  { %3857 = vmatpush3.bf16.msra.mxu0 %v4923_v47  ;;  %3865 = vmatpush3.bf16.msra.mxu1 %v4371_v52 }
 0x122   :  { %3962 = vmatprep.subr.bf16.mxu0 %v4439_v0  ;;  %v872_v60 = vmax.f32 %v4157_v54, 0.0  ;;  %3866 = vmatprep.subr.bf16.mxu1 %v4439_v0 }
 0x123   :  { %v641_v55 = vpop.f32.mrb[8].mxu0 }
 0x124   :  { %3859 = vmatmul.mubr.bf16.vlgmr.msra.gmra.mrb[20].mxu0 %v4904_v42  ;;  %v4154_v57 = vadd.f32 %v4886_v15, %v641_v55  ;;  %v3700_v58 = vpop.f32.mrb[9].mxu0  ;;  %v4941_v2 = vpack.c.bf16 %v872_v60, %v871_v53 }
 0x125   :  { %3963 = vmatpush3.bf16.msra.mxu0 %v4927_v49  ;;  %3978 = vmatprep.mubr.msk.bf16.mxu0 %vm4440_vm0, %v4439_v0  ;;  %v644_v61 = vpop.f32.mrb[10].mxu0 }
 0x126   :  { %3964 = vmatprep.subr.bf16.mxu0 %v4439_v0  ;;  %v650_v62 = vmax.f32 %v4154_v57, 0.0  ;;  %v4155_v63 = vadd.f32 %v4886_v15, %v644_v61  ;;  %v3701_v1 = vpop.f32.mrb[11].mxu0  ;;  %v4372_v61 = vld [vmem:[%s5349_s6 + $0x10] sm:$0xff]  }
 0x127   :  { %3867 = vmatpush3.bf16.msra.mxu1 %v4372_v61  ;;  %v4390_v61 = vld [vmem:[%s5349_s6 + $0xa0] sm:$0xff]  }
 0x128   :  { %v651_v3 = vmax.f32 %v4155_v63, 0.0  ;;  %3868 = vmatprep.subr.bf16.mxu1 %v4439_v0 }
 0x129   :  { %3965 = vmatpush3.bf16.msra.mxu0 %v4935_v59 }
 0x12a   :  { %3966 = vmatprep.subr.bf16.mxu0 %v4439_v0  ;;  %v4947_v5 = vpack.c.bf16 %v651_v3, %v650_v62 }
 0x12d   :  { %3967 = vmatpush3.bf16.msra.mxu0 %v4944_v4 }
 0x12e   :  { %3968 = vmatprep.subr.bf16.mxu0 %v4439_v0 }
 0x131   :  { %3969 = vmatpush3.bf16.msra.mxu0 %v4950_v6 }
 0x132   :  { %3970 = vmatprep.subr.bf16.mxu0 %v4439_v0 }
 0x135   :  { %3971 = vmatpush3.bf16.msra.mxu0 %v4954_v16 }
 0x136   :  { %3972 = vmatprep.subr.bf16.mxu0 %v4439_v0 }
 0x139   :  { %3973 = vmatpush3.bf16.msra.mxu0 %v4958_v17 }
 0x13a   :  { %3974 = vmatprep.subr.bf16.mxu0 %v4439_v0 }
 0x13d   :  { %3975 = vmatpush3.bf16.msra.mxu0 %v4962_v18  ;;  %v1304_v20 = vpop.f32.mrb[8].mxu1 }
 0x13e   :  { %3976 = vmatprep.subr.bf16.mxu0 %v4439_v0  ;;  %v4160_v21 = vadd.f32 %v4886_v15, %v1304_v20  ;;  %v3772_v22 = vpop.f32.mrb[9].mxu1 }
 0x13f   :  { %v1307_v23 = vpop.f32.mrb[10].mxu1  ;;  %v4373_v22 = vld [vmem:[%s5349_s6 + $0x18] sm:$0xff]  }
 0x140   :  { %v1313_v26 = vmax.f32 %v4160_v21, 0.0  ;;  %v4161_v27 = vadd.f32 %v4886_v15, %v1307_v23  ;;  %v3773_v28 = vpop.f32.mrb[11].mxu1  ;;  %3869 = vmatpush3.bf16.msra.mxu1 %v4373_v22  ;;  %v4397_v22 = vld [vmem:[%s5349_s6 + $0xd8] sm:$0xff]  }
 0x141   :  { %3977 = vmatpush3.bf16.msra.mxu0 %v4966_v19  ;;  %3870 = vmatprep.subr.bf16.mxu1 %v4439_v0  ;;  %v4377_v28 = vld [vmem:[%s5349_s6 + $0x38] sm:$0xff]  }
 0x142   :  { %3982 = vmatprep.subr.bf16.mxu0 %v4439_v0  ;;  %v1314_v32 = vmax.f32 %v4161_v27, 0.0  ;;  %v4376_v27 = vld [vmem:[%s5349_s6 + $0x30] sm:$0xff]  }
 0x143   :  { %v1083_v24 = vpop.f32.mrb[12].mxu0 }
 0x144   :  { %3979 = vmatmul.mubr.bf16.vlgmr.msra.gmra.mrb[24].mxu0 %v4941_v2  ;;  %v4158_v29 = vadd.f32 %v4886_v15, %v1083_v24  ;;  %v3748_v30 = vpop.f32.mrb[13].mxu0  ;;  %v4980_v37 = vpack.c.bf16 %v1314_v32, %v1313_v26  ;;  %v4375_v26 = vld [vmem:[%s5349_s6 + $0x28] sm:$0xff]  }
 0x145   :  { %3983 = vmatpush3.bf16.msra.mxu0 %v4845_v7  ;;  %v1086_v31 = vpop.f32.mrb[14].mxu0  ;;  %3998 = vmatprep.mubr.msk.bf16.mxu0 %vm4440_vm0, %v4439_v0 }
 0x146   :  { %3984 = vmatprep.subr.bf16.mxu0 %v4439_v0  ;;  %v1092_v34 = vmax.f32 %v4158_v29, 0.0  ;;  %v4159_v35 = vadd.f32 %v4886_v15, %v1086_v31  ;;  %v3749_v36 = vpop.f32.mrb[15].mxu0  ;;  %v5111_v29 = vld [vmem:[%s5348_s5] ss:$0 sm:$0xff] }
 0x148   :  { %v1093_v38 = vmax.f32 %v4159_v35, 0.0 }
 0x149   :  { %3985 = vmatpush3.bf16.msra.mxu0 %v4852_v8 }
 0x14a   :  { %3986 = vmatprep.subr.bf16.mxu0 %v4439_v0  ;;  %v1094_v39 = vpack.c.bf16 %v1093_v38, %v1092_v34 }
 0x14d   :  { %3987 = vmatpush3.bf16.msra.mxu0 %v4858_v9 }
 0x14e   :  { %3988 = vmatprep.subr.bf16.mxu0 %v4439_v0 }
 0x151   :  { %3989 = vmatpush3.bf16.msra.mxu0 %v4862_v10 }
 0x152   :  { %3990 = vmatprep.subr.bf16.mxu0 %v4439_v0 }
 0x155   :  { %3991 = vmatpush3.bf16.msra.mxu0 %v4866_v11 }
 0x156   :  { %3992 = vmatprep.subr.bf16.mxu0 %v4439_v0 }
 0x159   :  { %3993 = vmatpush3.bf16.msra.mxu0 %v4870_v12 }
 0x15a   :  { %3994 = vmatprep.subr.bf16.mxu0 %v4439_v0 }
 0x15d   :  { %3995 = vmatpush3.bf16.msra.mxu0 %v4874_v13  ;;  %v1746_v48 = vpop.f32.mrb[12].mxu1 }
 0x15e   :  { %3996 = vmatprep.subr.bf16.mxu0 %v4439_v0  ;;  %v4164_v50 = vadd.f32 %v4886_v15, %v1746_v48  ;;  %v3820_v51 = vpop.f32.mrb[13].mxu1 }
 0x15f   :  { %v1749_v53 = vpop.f32.mrb[14].mxu1 }
 0x160   :  { %v1755_v55 = vmax.f32 %v4164_v50, 0.0  ;;  %v4165_v56 = vadd.f32 %v4886_v15, %v1749_v53  ;;  %v3821_v57 = vpop.f32.mrb[15].mxu1 }
 0x161   :  { %3997 = vmatpush3.bf16.msra.mxu0 %v4878_v14  ;;  %v4387_v57 = vld [vmem:[%s5349_s6 + $0x88] sm:$0xff]  }
 0x162   :  { %4002 = vmatprep.subr.bf16.mxu0 %v4439_v0  ;;  %v1756_v63 = vmax.f32 %v4165_v56, 0.0 }
 0x163   :  { %v1525_v54 = vpop.f32.mrb[16].mxu0 }
 0x164   :  { %3999 = vmatmul.mubr.bf16.vlgmr.msra.gmra.mrb[24].mxu0 %v1094_v39  ;;  %v4162_v58 = vadd.f32 %v4886_v15, %v1525_v54  ;;  %v3796_v60 = vpop.f32.mrb[17].mxu0  ;;  %v5015_v21 = vpack.c.bf16 %v1756_v63, %v1755_v55  ;;  %v4386_v55 = vld [vmem:[%s5349_s6 + $0x80] sm:$0xff]   ;;  %v4392_v63 = vld [vmem:[%s5349_s6 + $0xb0] sm:$0xff]  }
 0x165   :  { %4003 = vmatpush3.bf16.msra.mxu0 %v4890_v25  ;;  %4018 = vmatprep.mubr.msk.bf16.mxu0 %vm4440_vm0, %v4439_v0  ;;  %v1528_v62 = vpop.f32.mrb[18].mxu0  ;;  %v4389_v60 = vld [vmem:[%s5349_s6 + $0x98] sm:$0xff]  }
 0x166   :  { %4004 = vmatprep.subr.bf16.mxu0 %v4439_v0  ;;  %v1534_v1 = vmax.f32 %v4162_v58, 0.0  ;;  %v4163_v3 = vadd.f32 %v4886_v15, %v1528_v62  ;;  %v3797_v20 = vpop.f32.mrb[19].mxu0  ;;  %v4374_v15 = vld [vmem:[%s5349_s6 + $0x20] sm:$0xff]   ;;  %v4388_v58 = vld [vmem:[%s5349_s6 + $0x90] sm:$0xff]   ;;  %v4391_v62 = vld [vmem:[%s5349_s6 + $0xa8] sm:$0xff]  }
 0x167   :  { %3871 = vmatpush3.bf16.msra.mxu1 %v4374_v15  ;;  %v4395_v20 = vld [vmem:[%s5349_s6 + $0xc8] sm:$0xff]   ;;  %v4400_v15 = vld [vmem:[%s5349_s6 + $0xf0] sm:$0xff]  }
 0x168   :  { %v1535_v23 = vmax.f32 %v4163_v3, 0.0  ;;  %3872 = vmatprep.subr.bf16.mxu1 %v4439_v0  ;;  %v4394_v3 = vld [vmem:[%s5349_s6 + $0xc0] sm:$0xff]  }
 0x169   :  { %4005 = vmatpush3.bf16.msra.mxu0 %v4894_v33 }
 0x16a   :  { %4006 = vmatprep.subr.bf16.mxu0 %v4439_v0  ;;  %v1536_v24 = vpack.c.bf16 %v1535_v23, %v1534_v1  ;;  %v4393_v1 = vld [vmem:[%s5349_s6 + $0xb8] sm:$0xff]   ;;  %v4398_v23 = vld [vmem:[%s5349_s6 + $0xe0] sm:$0xff]  }
 0x16b   :  { %3873 = vmatpush3.bf16.msra.mxu1 %v4375_v26  ;;  %v4401_v26 = vld [vmem:[%s5349_s6 + $0xf8] sm:$0xff]  }
 0x16c   :  { %3874 = vmatprep.subr.bf16.mxu1 %v4439_v0 }
 0x16d   :  { %4007 = vmatpush3.bf16.msra.mxu0 %v4901_v40 }
 0x16e   :  { %4008 = vmatprep.subr.bf16.mxu0 %v4439_v0 }
 0x16f   :  { %3875 = vmatpush3.bf16.msra.mxu1 %v4376_v27  ;;  %v4402_v27 = vld [vmem:[%s5352_s9] sm:$0xff]  }
 0x170   :  { %3876 = vmatprep.subr.bf16.mxu1 %v4439_v0 }
 0x171   :  { %4009 = vmatpush3.bf16.msra.mxu0 %v4907_v43 }
 0x172   :  { %4010 = vmatprep.subr.bf16.mxu0 %v4439_v0 }
 0x173   :  { %3877 = vmatpush3.bf16.msra.mxu1 %v4377_v28  ;;  %v4403_v28 = vld [vmem:[%s5344_s1] sm:$0xff]  }
 0x174   :  { %3882 = vmatprep.subr.bf16.mxu1 %v4439_v0 }
 0x175   :  { %4011 = vmatpush3.bf16.msra.mxu0 %v4911_v44 }
 0x176   :  { %4012 = vmatprep.subr.bf16.mxu0 %v4439_v0 }
 0x179   :  { %4013 = vmatpush3.bf16.msra.mxu0 %v4915_v45 }
 0x17a   :  { %4014 = vmatprep.subr.bf16.mxu0 %v4439_v0 }
 0x17d   :  { %4015 = vmatpush3.bf16.msra.mxu0 %v4919_v46 }
 0x17e   :  { %4016 = vmatprep.subr.bf16.mxu0 %v4439_v0 }
 0x181   :  { %4017 = vmatpush3.bf16.msra.mxu0 %v4923_v47 }
 0x182   :  { %4042 = vmatprep.subr.bf16.mxu0 %v4439_v0 }
 0x184   :  { %4019 = vmatmul.mubr.bf16.vlgmr.msra.gmra.mrb[24].mxu0 %v4980_v37 }
 0x185   :  { %4043 = vmatpush3.bf16.msra.mxu0 %v4927_v49  ;;  %4058 = vmatprep.mubr.msk.bf16.mxu0 %vm4440_vm0, %v4439_v0 }
 0x186   :  { %4044 = vmatprep.subr.bf16.mxu0 %v4439_v0 }
 0x189   :  { %4045 = vmatpush3.bf16.msra.mxu0 %v4935_v59 }
 0x18a   :  { %4046 = vmatprep.subr.bf16.mxu0 %v4439_v0 }
 0x18d   :  { %4047 = vmatpush3.bf16.msra.mxu0 %v4944_v4 }
 0x18e   :  { %4048 = vmatprep.subr.bf16.mxu0 %v4439_v0 }
 0x191   :  { %4049 = vmatpush3.bf16.msra.mxu0 %v4950_v6 }
 0x192   :  { %4050 = vmatprep.subr.bf16.mxu0 %v4439_v0 }
 0x195   :  { %4051 = vmatpush3.bf16.msra.mxu0 %v4954_v16 }
 0x196   :  { %4052 = vmatprep.subr.bf16.mxu0 %v4439_v0 }
 0x199   :  { %4053 = vmatpush3.bf16.msra.mxu0 %v4958_v17 }
 0x19a   :  { %4054 = vmatprep.subr.bf16.mxu0 %v4439_v0 }
 0x19d   :  { %4055 = vmatpush3.bf16.msra.mxu0 %v4962_v18 }
 0x19e   :  { %4056 = vmatprep.subr.bf16.mxu0 %v4439_v0 }
 0x1a1   :  { %4057 = vmatpush3.bf16.msra.mxu0 %v4966_v19 }
 0x1a2   :  { %4062 = vmatprep.subr.bf16.mxu0 %v4439_v0 }
 0x1a4   :  { %4059 = vmatmul.mubr.bf16.vlgmr.msra.gmra.mrb[28].mxu0 %v4980_v37 }
 0x1a5   :  { %4063 = vmatpush3.bf16.msra.mxu0 %v4845_v7  ;;  %4078 = vmatprep.mubr.msk.bf16.mxu0 %vm4440_vm0, %v4439_v0 }
 0x1a6   :  { %4064 = vmatprep.subr.bf16.mxu0 %v4439_v0 }
 0x1a9   :  { %4065 = vmatpush3.bf16.msra.mxu0 %v4852_v8 }
 0x1aa   :  { %4066 = vmatprep.subr.bf16.mxu0 %v4439_v0 }
 0x1ad   :  { %4067 = vmatpush3.bf16.msra.mxu0 %v4858_v9 }
 0x1ae   :  { %4068 = vmatprep.subr.bf16.mxu0 %v4439_v0 }
 0x1b1   :  { %4069 = vmatpush3.bf16.msra.mxu0 %v4862_v10 }
 0x1b2   :  { %4070 = vmatprep.subr.bf16.mxu0 %v4439_v0 }
 0x1b5   :  { %4071 = vmatpush3.bf16.msra.mxu0 %v4866_v11 }
 0x1b6   :  { %4072 = vmatprep.subr.bf16.mxu0 %v4439_v0 }
 0x1b9   :  { %4073 = vmatpush3.bf16.msra.mxu0 %v4870_v12 }
 0x1ba   :  { %4074 = vmatprep.subr.bf16.mxu0 %v4439_v0 }
 0x1bd   :  { %4075 = vmatpush3.bf16.msra.mxu0 %v4874_v13 }
 0x1be   :  { %4076 = vmatprep.subr.bf16.mxu0 %v4439_v0 }
 0x1c1   :  { %4077 = vmatpush3.bf16.msra.mxu0 %v4878_v14 }
 0x1c2   :  { %4082 = vmatprep.subr.bf16.mxu0 %v4439_v0 }
 0x1c4   :  { %4079 = vmatmul.mubr.bf16.vlgmr.msra.gmra.mrb[28].mxu0 %v1536_v24  ;;  %v4399_v24 = vld [vmem:[%s5349_s6 + $0xe8] sm:$0xff]  }
 0x1c5   :  { %4083 = vmatpush3.bf16.msra.mxu0 %v4890_v25  ;;  %4098 = vmatprep.mubr.msk.bf16.mxu0 %vm4440_vm0, %v4439_v0 }
 0x1c6   :  { %4084 = vmatprep.subr.bf16.mxu0 %v4439_v0 }
 0x1c9   :  { %4085 = vmatpush3.bf16.msra.mxu0 %v4894_v33 }
 0x1ca   :  { %4086 = vmatprep.subr.bf16.mxu0 %v4439_v0 }
 0x1cd   :  { %4087 = vmatpush3.bf16.msra.mxu0 %v4901_v40 }
 0x1ce   :  { %4088 = vmatprep.subr.bf16.mxu0 %v4439_v0 }
 0x1d1   :  { %4089 = vmatpush3.bf16.msra.mxu0 %v4907_v43 }
 0x1d2   :  { %4090 = vmatprep.subr.bf16.mxu0 %v4439_v0 }
 0x1d5   :  { %4091 = vmatpush3.bf16.msra.mxu0 %v4911_v44 }
 0x1d6   :  { %4092 = vmatprep.subr.bf16.mxu0 %v4439_v0 }
 0x1d9   :  { %4093 = vmatpush3.bf16.msra.mxu0 %v4915_v45 }
 0x1da   :  { %4094 = vmatprep.subr.bf16.mxu0 %v4439_v0 }
 0x1dd   :  { %4095 = vmatpush3.bf16.msra.mxu0 %v4919_v46 }
 0x1de   :  { %4096 = vmatprep.subr.bf16.mxu0 %v4439_v0 }
 0x1e1   :  { %4097 = vmatpush3.bf16.msra.mxu0 %v4923_v47 }
 0x1e4   :  { %4099 = vmatmul.mubr.bf16.vlgmr.msra.gmra.mrb[28].mxu0 %v5015_v21  ;;  %v4396_v21 = vld [vmem:[%s5349_s6 + $0xd0] sm:$0xff]  }
 0x1f7   :  { %v1977_v30 = vpop.f32.mrb[20].mxu0 }
 0x1f8   :  { %v4166_v31 = vadd.f32 %v5111_v29, %v1977_v30  ;;  %v3860_v32 = vpop.f32.mrb[21].mxu0  ;;  %v4405_v30 = vld [vmem:[%s5351_s8 + $0x8] sm:$0xff]  }
 0x1f9   :  { %v1980_v34 = vpop.f32.mrb[22].mxu0  ;;  %v4407_v32 = vld [vmem:[%s5351_s8 + $0x18] sm:$0xff]  }
 0x1fa   :  { %v4167_v35 = vadd.f32 %v5111_v29, %v1980_v34  ;;  %v3861_v36 = vpop.f32.mrb[23].mxu0  ;;  %v1986_v37 = vmax.f32 %v4166_v31, 0.0  ;;  %v4406_v31 = vld [vmem:[%s5351_s8 + $0x10] sm:$0xff]   ;;  %v4408_v34 = vld [vmem:[%s5351_s8 + $0x20] sm:$0xff]  }
 0x1fb   :  { %v4410_v36 = vld [vmem:[%s5351_s8 + $0x30] sm:$0xff]  }
 0x1fc   :  { %v1987_v38 = vmax.f32 %v4167_v35, 0.0  ;;  %v4409_v35 = vld [vmem:[%s5351_s8 + $0x28] sm:$0xff]  }
 0x1fe   :  { %v1988_v39 = vpack.c.bf16 %v1987_v38, %v1986_v37  ;;  %v4411_v37 = vld [vmem:[%s5351_s8 + $0x38] sm:$0xff]   ;;  %v3329_v38 = vld [vmem:[%s5350_s7] ss:$0 sm:$0xff] }
 0x200   :  { %3879 = vmatmul.mubr.bf16.vlgmr.msra.gmra.mrb[16].mxu1 %v1988_v39 }
 0x201   :  { %3883 = vmatpush3.bf16.msra.mxu1 %v4927_v49  ;;  %3898 = vmatprep.mubr.msk.bf16.mxu1 %vm4440_vm0, %v4439_v0 }
 0x202   :  { %3884 = vmatprep.subr.bf16.mxu1 %v4439_v0 }
 0x205   :  { %3885 = vmatpush3.bf16.msra.mxu1 %v4935_v59 }
 0x206   :  { %3886 = vmatprep.subr.bf16.mxu1 %v4439_v0 }
 0x209   :  { %3887 = vmatpush3.bf16.msra.mxu1 %v4944_v4 }
 0x20a   :  { %3888 = vmatprep.subr.bf16.mxu1 %v4439_v0 }
 0x20d   :  { %3889 = vmatpush3.bf16.msra.mxu1 %v4950_v6 }
 0x20e   :  { %3890 = vmatprep.subr.bf16.mxu1 %v4439_v0 }
 0x211   :  { %3891 = vmatpush3.bf16.msra.mxu1 %v4954_v16 }
 0x212   :  { %3892 = vmatprep.subr.bf16.mxu1 %v4439_v0 }
 0x215   :  { %3893 = vmatpush3.bf16.msra.mxu1 %v4958_v17 }
 0x216   :  { %3894 = vmatprep.subr.bf16.mxu1 %v4439_v0 }
 0x219   :  { %3895 = vmatpush3.bf16.msra.mxu1 %v4962_v18 }
 0x21a   :  { %3896 = vmatprep.subr.bf16.mxu1 %v4439_v0 }
 0x21d   :  { %3897 = vmatpush3.bf16.msra.mxu1 %v4966_v19 }
 0x21e   :  { %3902 = vmatprep.subr.bf16.mxu1 %v4439_v0 }
 0x220   :  { %3899 = vmatmul.mubr.bf16.vlgmr.msra.gmra.mrb[20].mxu1 %v4904_v42  ;;  %v4380_v42 = vld [vmem:[%s5349_s6 + $0x50] sm:$0xff]  }
 0x221   :  { %3903 = vmatpush3.bf16.msra.mxu1 %v4845_v7  ;;  %3918 = vmatprep.mubr.msk.bf16.mxu1 %vm4440_vm0, %v4439_v0 }
 0x222   :  { %3904 = vmatprep.subr.bf16.mxu1 %v4439_v0 }
 0x225   :  { %3905 = vmatpush3.bf16.msra.mxu1 %v4852_v8 }
 0x226   :  { %3906 = vmatprep.subr.bf16.mxu1 %v4439_v0 }
 0x229   :  { %3907 = vmatpush3.bf16.msra.mxu1 %v4858_v9 }
 0x22a   :  { %3908 = vmatprep.subr.bf16.mxu1 %v4439_v0 }
 0x22d   :  { %3909 = vmatpush3.bf16.msra.mxu1 %v4862_v10 }
 0x22e   :  { %3910 = vmatprep.subr.bf16.mxu1 %v4439_v0 }
 0x231   :  { %3911 = vmatpush3.bf16.msra.mxu1 %v4866_v11 }
 0x232   :  { %3912 = vmatprep.subr.bf16.mxu1 %v4439_v0 }
 0x235   :  { %3913 = vmatpush3.bf16.msra.mxu1 %v4870_v12 }
 0x236   :  { %3914 = vmatprep.subr.bf16.mxu1 %v4439_v0 }
 0x239   :  { %3915 = vmatpush3.bf16.msra.mxu1 %v4874_v13 }
 0x23a   :  { %3916 = vmatprep.subr.bf16.mxu1 %v4439_v0 }
 0x23d   :  { %3917 = vmatpush3.bf16.msra.mxu1 %v4878_v14 }
 0x23e   :  { %3922 = vmatprep.subr.bf16.mxu1 %v4439_v0 }
 0x240   :  { %3919 = vmatmul.mubr.bf16.vlgmr.msra.gmra.mrb[20].mxu1 %v4947_v5 }
 0x241   :  { %3923 = vmatpush3.bf16.msra.mxu1 %v4890_v25  ;;  %3938 = vmatprep.mubr.msk.bf16.mxu1 %vm4440_vm0, %v4439_v0  ;;  %v4378_v25 = vld [vmem:[%s5349_s6 + $0x40] sm:$0xff]  }
 0x242   :  { %3924 = vmatprep.subr.bf16.mxu1 %v4439_v0 }
 0x245   :  { %3925 = vmatpush3.bf16.msra.mxu1 %v4894_v33 }
 0x246   :  { %3926 = vmatprep.subr.bf16.mxu1 %v4439_v0 }
 0x249   :  { %3927 = vmatpush3.bf16.msra.mxu1 %v4901_v40  ;;  %v4379_v40 = vld [vmem:[%s5349_s6 + $0x48] sm:$0xff]  }
 0x24a   :  { %3928 = vmatprep.subr.bf16.mxu1 %v4439_v0 }
 0x24d   :  { %3929 = vmatpush3.bf16.msra.mxu1 %v4907_v43  ;;  %v4381_v43 = vld [vmem:[%s5349_s6 + $0x58] sm:$0xff]  }
 0x24e   :  { %3930 = vmatprep.subr.bf16.mxu1 %v4439_v0 }
 0x251   :  { %3931 = vmatpush3.bf16.msra.mxu1 %v4911_v44  ;;  %v4382_v44 = vld [vmem:[%s5349_s6 + $0x60] sm:$0xff]  }
 0x252   :  { %3932 = vmatprep.subr.bf16.mxu1 %v4439_v0 }
 0x255   :  { %3933 = vmatpush3.bf16.msra.mxu1 %v4915_v45  ;;  %v4383_v45 = vld [vmem:[%s5349_s6 + $0x68] sm:$0xff]  }
 0x256   :  { %3934 = vmatprep.subr.bf16.mxu1 %v4439_v0 }
 0x257   :  { %v2530_v7 = vpop.f32.mrb[24].mxu0 }
 0x258   :  { %v4172_v8 = vadd.f32 %v5111_v29, %v2530_v7  ;;  %v4020_v9 = vpop.f32.mrb[25].mxu0 }
 0x259   :  { %3935 = vmatpush3.bf16.msra.mxu1 %v4919_v46  ;;  %v2533_v10 = vpop.f32.mrb[26].mxu0  ;;  %v4384_v46 = vld [vmem:[%s5349_s6 + $0x70] sm:$0xff]  }
 0x25a   :  { %v2539_v11 = vmax.f32 %v4172_v8, 0.0  ;;  %v4173_v12 = vadd.f32 %v5111_v29, %v2533_v10  ;;  %3936 = vmatprep.subr.bf16.mxu1 %v4439_v0  ;;  %v4021_v13 = vpop.f32.mrb[27].mxu0 }
 0x25c   :  { %v2540_v14 = vmax.f32 %v4173_v12, 0.0 }
 0x25d   :  { %3937 = vmatpush3.bf16.msra.mxu1 %v4923_v47  ;;  %v4385_v47 = vld [vmem:[%s5349_s6 + $0x78] sm:$0xff]  }
 0x25e   :  { %v5175_v33 = vpack.c.bf16 %v2540_v14, %v2539_v11  ;;  %3942 = vmatprep.subr.bf16.mxu1 %v4439_v0 }
 0x260   :  { %3939 = vmatmul.mubr.bf16.vlgmr.msra.gmra.mrb[20].mxu1 %v4941_v2 }
 0x261   :  { %3943 = vmatpush3.bf16.msra.mxu1 %v4378_v25  ;;  %3958 = vmatprep.mubr.msk.bf16.mxu1 %vm4440_vm0, %v4439_v0 }
 0x262   :  { %3944 = vmatprep.subr.bf16.mxu1 %v4439_v0 }
 0x265   :  { %3945 = vmatpush3.bf16.msra.mxu1 %v4379_v40 }
 0x266   :  { %3946 = vmatprep.subr.bf16.mxu1 %v4439_v0 }
 0x269   :  { %3947 = vmatpush3.bf16.msra.mxu1 %v4380_v42 }
 0x26a   :  { %3948 = vmatprep.subr.bf16.mxu1 %v4439_v0 }
 0x26d   :  { %3949 = vmatpush3.bf16.msra.mxu1 %v4381_v43  ;;  %v3421_v43 = vld [vmem:[%s5353_s10] ss:$0 sm:$0xff] }
 0x26e   :  { %3950 = vmatprep.subr.bf16.mxu1 %v4439_v0 }
 0x271   :  { %3951 = vmatpush3.bf16.msra.mxu1 %v4382_v44 }
 0x272   :  { %3952 = vmatprep.subr.bf16.mxu1 %v4439_v0 }
 0x275   :  { %3953 = vmatpush3.bf16.msra.mxu1 %v4383_v45 }
 0x276   :  { %3954 = vmatprep.subr.bf16.mxu1 %v4439_v0 }
 0x279   :  { %3955 = vmatpush3.bf16.msra.mxu1 %v4384_v46 }
 0x27a   :  { %3956 = vmatprep.subr.bf16.mxu1 %v4439_v0 }
 0x27d   :  { %3957 = vmatpush3.bf16.msra.mxu1 %v4385_v47 }
 0x27e   :  { %4022 = vmatprep.subr.bf16.mxu1 %v4439_v0 }
 0x2b7   :  { %v2772_v49 = vpop.f32.mrb[28].mxu0 }
 0x2b8   :  { %v4174_v59 = vadd.f32 %v5111_v29, %v2772_v49  ;;  %v4100_v2 = vpop.f32.mrb[29].mxu0 }
 0x2b9   :  { %v2775_v4 = vpop.f32.mrb[30].mxu0  ;;  %v3422_v2 = vld [vmem:[%s5354_s11] ss:$0 sm:$0xff] }
 0x2ba   :  { %v4175_v5 = vadd.f32 %v5111_v29, %v2775_v4  ;;  %v4101_v6 = vpop.f32.mrb[31].mxu0  ;;  %v2781_v16 = vmax.f32 %v4174_v59, 0.0 }
 0x2bc   :  { %v2782_v17 = vmax.f32 %v4175_v5, 0.0 }
 0x2be   :  { %v2783_v18 = vpack.c.bf16 %v2782_v17, %v2781_v16 }
 0x333   :  { %v2288_v19 = vpop.f32.mrb[20].mxu1 }
 0x334   :  { %v4170_v41 = vadd.f32 %v5111_v29, %v2288_v19  ;;  %v3940_v48 = vpop.f32.mrb[21].mxu1 }
 0x335   :  { %v2291_v50 = vpop.f32.mrb[22].mxu1 }
 0x336   :  { %v4171_v51 = vadd.f32 %v5111_v29, %v2291_v50  ;;  %v3941_v52 = vpop.f32.mrb[23].mxu1  ;;  %v2297_v53 = vmax.f32 %v4170_v41, 0.0  ;;  %v4404_v29 = vld [vmem:[%s5351_s8] sm:$0xff]  }
 0x338   :  { %v2298_v54 = vmax.f32 %v4171_v51, 0.0 }
 0x33a   :  { %v2299_v56 = vpack.c.bf16 %v2298_v54, %v2297_v53 }
 0x33c   :  { %3959 = vmatmul.mubr.bf16.vlgmr.msra.gmra.mrb[16].mxu1 %v2299_v56 }
 0x33d   :  { %4023 = vmatpush3.bf16.msra.mxu1 %v4386_v55  ;;  %4038 = vmatprep.mubr.msk.bf16.mxu1 %vm4440_vm0, %v4439_v0 }
 0x33e   :  { %4024 = vmatprep.subr.bf16.mxu1 %v4439_v0 }
 0x341   :  { %4025 = vmatpush3.bf16.msra.mxu1 %v4387_v57 }
 0x342   :  { %4026 = vmatprep.subr.bf16.mxu1 %v4439_v0 }
 0x345   :  { %4027 = vmatpush3.bf16.msra.mxu1 %v4388_v58 }
 0x346   :  { %4028 = vmatprep.subr.bf16.mxu1 %v4439_v0 }
 0x349   :  { %4029 = vmatpush3.bf16.msra.mxu1 %v4389_v60 }
 0x34a   :  { %4030 = vmatprep.subr.bf16.mxu1 %v4439_v0 }
 0x34d   :  { %4031 = vmatpush3.bf16.msra.mxu1 %v4390_v61 }
 0x34e   :  { %4032 = vmatprep.subr.bf16.mxu1 %v4439_v0 }
 0x351   :  { %4033 = vmatpush3.bf16.msra.mxu1 %v4391_v62 }
 0x352   :  { %4034 = vmatprep.subr.bf16.mxu1 %v4439_v0 }
 0x355   :  { %4035 = vmatpush3.bf16.msra.mxu1 %v4392_v63 }
 0x356   :  { %4036 = vmatprep.subr.bf16.mxu1 %v4439_v0 }
 0x359   :  { %4037 = vmatpush3.bf16.msra.mxu1 %v4393_v1 }
 0x35a   :  { %4102 = vmatprep.subr.bf16.mxu1 %v4439_v0 }
 0x35c   :  { %4039 = vmatmul.mubr.bf16.vlgmr.msra.gmra.mrb[16].mxu1 %v5175_v33 }
 0x35d   :  { %4103 = vmatpush3.bf16.msra.mxu1 %v4394_v3  ;;  %4118 = vmatprep.mubr.msk.bf16.mxu1 %vm4440_vm0, %v4439_v0 }
 0x35e   :  { %4104 = vmatprep.subr.bf16.mxu1 %v4439_v0 }
 0x361   :  { %4105 = vmatpush3.bf16.msra.mxu1 %v4395_v20 }
 0x362   :  { %4106 = vmatprep.subr.bf16.mxu1 %v4439_v0 }
 0x365   :  { %4107 = vmatpush3.bf16.msra.mxu1 %v4396_v21 }
 0x366   :  { %4108 = vmatprep.subr.bf16.mxu1 %v4439_v0 }
 0x369   :  { %4109 = vmatpush3.bf16.msra.mxu1 %v4397_v22 }
 0x36a   :  { %4110 = vmatprep.subr.bf16.mxu1 %v4439_v0 }
 0x36d   :  { %4111 = vmatpush3.bf16.msra.mxu1 %v4398_v23 }
 0x36e   :  { %4112 = vmatprep.subr.bf16.mxu1 %v4439_v0 }
 0x371   :  { %4113 = vmatpush3.bf16.msra.mxu1 %v4399_v24 }
 0x372   :  { %4114 = vmatprep.subr.bf16.mxu1 %v4439_v0 }
 0x375   :  { %4115 = vmatpush3.bf16.msra.mxu1 %v4400_v15 }
 0x376   :  { %4116 = vmatprep.subr.bf16.mxu1 %v4439_v0 }
 0x379   :  { %4117 = vmatpush3.bf16.msra.mxu1 %v4401_v26 }
 0x37a   :  { %4122 = vmatprep.subr.bf16.mxu1 %v4439_v0 }
 0x37c   :  { %4119 = vmatmul.mubr.bf16.vlgmr.msra.gmra.mrb[16].mxu1 %v2783_v18  ;;  %v3085_v18 = vstv %s5355_s12 }
 0x37d   :  { %4123 = vmatpush3.bf16.msra.mxu1 %v4402_v27  ;;  %4124 = vmatprep.mubr.msk.bf16.mxu1 %vm4440_vm0, %v4439_v0 }
 0x37e   :  { %4128 = vmatprep.subr.bf16.mxu1 %v4439_v0 }
 0x384   :  { %4125 = vmatmul.mubr.msk.bf16.vlgmr.msra.gmra.mrb[24].mxu1 %vm2926_vm2, %v4403_v28 }
 0x385   :  { %4129 = vmatpush3.bf16.msra.mxu1 %v4404_v29  ;;  %4144 = vmatprep.mubr.msk.bf16.mxu1 %vm4440_vm0, %v4439_v0 }
 0x386   :  { %4130 = vmatprep.subr.bf16.mxu1 %v4439_v0 }
 0x389   :  { %4131 = vmatpush3.bf16.msra.mxu1 %v4405_v30 }
 0x38a   :  { %4132 = vmatprep.subr.bf16.mxu1 %v4439_v0 }
 0x38d   :  { %4133 = vmatpush3.bf16.msra.mxu1 %v4406_v31 }
 0x38e   :  { %4134 = vmatprep.subr.bf16.mxu1 %v4439_v0 }
 0x391   :  { %4135 = vmatpush3.bf16.msra.mxu1 %v4407_v32 }
 0x392   :  { %4136 = vmatprep.subr.bf16.mxu1 %v4439_v0 }
 0x395   :  { %4137 = vmatpush3.bf16.msra.mxu1 %v4408_v34 }
 0x396   :  { %4138 = vmatprep.subr.bf16.mxu1 %v4439_v0 }
 0x399   :  { %4139 = vmatpush3.bf16.msra.mxu1 %v4409_v35 }
 0x39a   :  { %4140 = vmatprep.subr.bf16.mxu1 %v4439_v0 }
 0x39d   :  { %4141 = vmatpush3.bf16.msra.mxu1 %v4410_v36 }
 0x39e   :  { %4142 = vmatprep.subr.bf16.mxu1 %v4439_v0 }
 0x3a1   :  { %4143 = vmatpush3.bf16.msra.mxu1 %v4411_v37 }
 0x44f   :  { %v2883_v39 = vpop.f32.mrb[16].mxu1 }
 0x450   :  { %v4168_v7 = vadd.f32 %v3329_v38, %v2883_v39  ;;  %v4120_v8 = vpop.f32.mrb[17].mxu1 }
 0x451   :  { %v2886_v9 = vpop.f32.mrb[18].mxu1 }
 0x452   :  { %v4169_v10 = vadd.f32 %v3329_v38, %v2886_v9  ;;  %v4121_v11 = vpop.f32.mrb[19].mxu1  ;;  %v2892_v12 = vmax.f32 %v4168_v7, 0.0 }
 0x454   :  { %v2893_v13 = vmax.f32 %v4169_v10, 0.0 }
 0x456   :  { %v2894_v14 = vpack.c.bf16 %v2893_v13, %v2892_v12 }
 0x457   :  { %v2964_v25 = vpop.f32.mrb[24].mxu1 }
 0x458   :  { %4145 = vmatmul.mubr.bf16.vlgmr.msra.gmra.mrb[28].mxu1 %v2894_v14  ;;  %v4126_v0 = vpop.f32.mrb[25].mxu1 }
 0x459   :  { %v2967_v33 = vpop.f32.mrb[26].mxu1 }
 0x45a   :  { %v4127_v40 = vpop.f32.mrb[27].mxu1 }
 0x52b   :  { %v3053_v42 = vpop.f32.mrb[28].mxu1 }
 0x52c   :  { %v3054_v44 = vadd.f32 %v3053_v42, %v2964_v25  ;;  %v4146_v45 = vpop.f32.mrb[29].mxu1 }
 0x52d   :  { %v3056_v46 = vpop.f32.mrb[30].mxu1 }
 0x52e   :  { %v3057_v47 = vadd.f32 %v3056_v46, %v2967_v33  ;;  %v4147_v49 = vpop.f32.mrb[31].mxu1  ;;  %v3067_v59 = vadd.f32 %v3421_v43, %v3054_v44 }
 0x530   :  { %v3068_v4 = vadd.f32 %v3421_v43, %v3057_v47  ;;  %v3069_v5 = vmax.f32 %v3067_v59, 0.0 }
 0x532   :  { %v3070_v6 = vmax.f32 %v3068_v4, 0.0  ;;  %v3078_v16 = vmul.f32 %v3422_v2, %v3069_v5 }
 0x534   :  { %3080 = vadd.xlane.f32.xlu0 %v3078_v16  ;;  %v3079_v17 = vmul.f32 %v3422_v2, %v3070_v6 }
 0x538   :  { %3082 = vadd.xlane.f32.xlu0 %v3079_v17 }
 0x5c1   :  { %v3081_v19 = vpop.xlane.xlu0 %3080 }
 0x5c2   :  { %v3086_v41 = vadd.f32 %v3085_v18, %v3081_v19 }
 0x5c4   :  { %3089 = vst.msk [vmem:[%s5356_s13] sm:$0xff] %vm3088_vm3, %v3086_v41 }
 0x5c5   :  { %v3083_v48 = vpop.xlane.xlu0 %3082 }
 0x5c6   :  { %v3087_v50 = vadd.f32 %v3085_v18, %v3083_v48 }
 0x5c8   :  { %3090 = vst.msk [vmem:[%s5356_s13 + $0x8] sm:$0xff] %vm3088_vm3, %v3087_v50 }
 0x5c9   :  { %3095 = vsyncpa [#allocation5], 1 }

</bundles_post_ra>
